<compile_context>
chip_gen: v5e
topology: v5e:2x2
jax: 0.10.0
libtpu: 0.0.40
codegen_flags: <defaults>
</compile_context>

<pallas_src>
import functools

import jax
import jax.numpy as jnp
from jax.experimental import pallas as pl
from jax.experimental.pallas import tpu as pltpu

# ----------------------------- model config ---------------------------------
B = 2            # batch
S = 8            # sequence length
IMG = 16         # spatial (16x16 "MNIST-ish" images)
F = IMG * IMG    # input_size = 256
H = 32           # hidden_rnn
FC = 16          # linear_dims = [32, 16]  (linear_dims[0] == hidden_rnn)
# rnn_n_layers = 2, rnn_type = 'LSTM'
# TODO(synk): nn.Dropout is identity at inference; no stochastic dropout in-kernel.

# Opt-in bf16 feeding of the recurrent MXU matmuls (v6e / v7x lever from the
# review). Off by default so the strict 1e-5 allclose vs the f32 reference holds.
USE_BF16_MXU = False


# ------------------------------ Pallas kernel --------------------------------
def mnist_rnn_kernel(
    x_ref,        # (S*B, F)      time-major flattened input
    w1_ref,       # (F+2, 4H)     [w_ih1^T ; b1 ; b2]   (b = b_ih + b_hh folded)
    wblk_ref,     # (2H, 8H)      [[w_ih2^T, w_hh1^T], [w_hh2^T, 0]]
    fc_ref,       # (H+3, FC)     [w_fc^T ; b_fc ; w_out row ; b_out bcast]
    o_ref,        # (S*B, 1)      output
    h2_all_ref,   # (S*B, H)      VMEM scratch: layer-2 hidden states, time-major
    *, seq, batch, hidden, use_bf16,
):
    h4 = 4 * hidden
    f = x_ref.shape[1]

    # --- loop-invariant reads / broadcasts, hoisted out of the recurrence ----
    w_blk = wblk_ref[...]                                          # (2H, 8H)
    b1 = w1_ref[f:f + 1, :]                                        # (1, 4H)
    b2 = jnp.broadcast_to(w1_ref[f + 1:f + 2, :], (batch, h4))     # (B, 4H)

    # Batched layer-1 input projection over ALL timesteps (+ folded bias):
    # one (S*B, F) x (F, 4H) matmul, entirely off the serial chain.
    gates_x1 = jnp.dot(x_ref[...], w1_ref[0:f, :],
                       preferred_element_type=jnp.float32) + b1    # (S*B, 4H)

    # Full-width (128-lane) LSTM activation: one sigmoid + one tanh over the
    # whole gate vector, cell-gate columns selected with a lane-iota mask.
    lane = jax.lax.broadcasted_iota(jnp.int32, (batch, h4), 1)
    is_cell_gate = (lane >= 2 * hidden) & (lane < 3 * hidden)

    def lstm_act(g):  # PyTorch gate order (i, f, g, o)
        a = jnp.where(is_cell_gate, jnp.tanh(g), jax.nn.sigmoid(g))
        return (a[:, 0:hidden], a[:, hidden:2 * hidden],
                a[:, 2 * hidden:3 * hidden], a[:, 3 * hidden:4 * hidden])

    h2 = jnp.zeros((batch, hidden), jnp.float32)
    c1 = jnp.zeros((batch, hidden), jnp.float32)
    c2 = jnp.zeros((batch, hidden), jnp.float32)
    hh1_part = None   # h1(t) @ w_hh1^T, produced one step early by the fused matmul

    for t in range(seq):  # statically unrolled (S = 8)
        # ----------------------------- layer-1 cell --------------------------
        g1 = gates_x1[t * batch:(t + 1) * batch, :]
        if t > 0:                      # h1(-1) == 0: skip the literal-zero add
            g1 = g1 + hh1_part
        i1, f1, gg1, o1 = lstm_act(g1)
        c1 = f1 * c1 + i1 * gg1
        h1 = o1 * jnp.tanh(c1)

        # ------------- single fused recurrent matmul on the chain ------------
        # [h1(t) | h2(t-1)] @ [[w_ih2^T, w_hh1^T], [w_hh2^T, 0]]
        #   lanes [0, 4H)   -> g2(t) - b2
        #   lanes [4H, 8H)  -> h1(t) @ w_hh1^T   (h-part of g1(t+1))
        hcat = jnp.concatenate([h1, h2], axis=1)                   # (B, 2H)
        if use_bf16:
            hcat = hcat.astype(jnp.bfloat16)
        fused = jnp.dot(hcat, w_blk,
                        preferred_element_type=jnp.float32)        # (B, 8H)
        hh1_part = fused[:, h4:2 * h4]

        # ----------------------------- layer-2 cell --------------------------
        i2, f2, gg2, o2 = lstm_act(fused[:, 0:h4] + b2)
        c2 = f2 * c2 + i2 * gg2
        h2 = o2 * jnp.tanh(c2)

        # Static-slice store into VMEM scratch (vst slot) instead of a Python
        # list + 8-way sublane concat; also bounds live ranges in the unroll.
        h2_all_ref[t * batch:(t + 1) * batch, :] = h2

    # --------------------- FC head once over all S*B rows --------------------
    h2_all = h2_all_ref[...]                                       # (S*B, H)
    w_fc = fc_ref[0:hidden, :]                                     # (H, FC)
    b_fc = fc_ref[hidden:hidden + 1, :]                            # (1, FC)
    w_out_row = fc_ref[hidden + 1:hidden + 2, :]                   # (1, FC)
    b_out = fc_ref[hidden + 2:hidden + 3, 0:1]                     # (1, 1)

    z = jnp.dot(h2_all, w_fc, preferred_element_type=jnp.float32) + b_fc
    z = jnp.maximum(z, 0.0)                       # ReLU (dropout = identity)
    # Output Linear (FC -> 1) as VPU multiply + lane reduce: no N=1 MXU issue.
    y = jnp.sum(z * w_out_row, axis=-1, keepdims=True) + b_out
    o_ref[...] = jax.nn.sigmoid(y)                # single output store


# ------------------------------ wrapper --------------------------------------
def _pack_params(p):
    """Wrapper-side packing: 12 PyTorch-layout tensors -> 3 VMEM slabs."""
    b1 = (p['b_ih1'] + p['b_hh1']).reshape(1, 4 * H)
    b2 = (p['b_ih2'] + p['b_hh2']).reshape(1, 4 * H)
    # Layer-1 input-projection slab with both folded biases appended as rows.
    w1_slab = jnp.concatenate([p['w_ih1'].T, b1, b2], axis=0)          # (F+2, 4H)
    # Fused recurrent block weight [[w_ih2^T, w_hh1^T], [w_hh2^T, 0]].
    top = jnp.concatenate([p['w_ih2'].T, p['w_hh1'].T], axis=1)        # (H, 8H)
    bot = jnp.concatenate([p['w_hh2'].T,
                           jnp.zeros((H, 4 * H), jnp.float32)], axis=1)
    w_blk = jnp.concatenate([top, bot], axis=0)                        # (2H, 8H)
    if USE_BF16_MXU:
        w_blk = w_blk.astype(jnp.bfloat16)
    # FC-head slab: w_fc^T rows, then b_fc, w_out row, broadcast b_out.
    fc_pack = jnp.concatenate([
        p['w_fc'].T,                                                   # (H, FC)
        p['b_fc'].reshape(1, FC),
        p['w_out'].reshape(1, FC),
        jnp.broadcast_to(p['b_out'].reshape(1, 1), (1, FC)),
    ], axis=0)                                                         # (H+3, FC)
    return w1_slab, w_blk, fc_pack


@jax.jit
def mnist_rnn_forward(inputs, params):
    """inputs: (B, S, IMG, IMG) float32. Returns (B, S, 1) float32."""
    batch, seq = inputs.shape[:2]
    x = inputs.astype(jnp.float32).reshape(batch, seq, -1)        # flatten(2, -1)
    x = jnp.transpose(x, (1, 0, 2)).reshape(seq * batch, -1)      # time-major (S*B, F)

    w1_slab, w_blk, fc_pack = _pack_params(params)

    vmem = pl.BlockSpec(memory_space=pltpu.MemorySpace.VMEM)
    out_flat = pl.pallas_call(
        functools.partial(mnist_rnn_kernel, seq=seq, batch=batch,
                          hidden=H, use_bf16=USE_BF16_MXU),
        out_shape=jax.ShapeDtypeStruct((seq * batch, 1), jnp.float32),
        in_specs=[vmem, vmem, vmem, vmem],      # 4 resident inputs, no grid
        out_specs=vmem,
        scratch_shapes=[pltpu.VMEM((seq * batch, H), jnp.float32)],
    )(x, w1_slab, w_blk, fc_pack)

    return jnp.transpose(out_flat.reshape(seq, batch, 1), (1, 0, 2))  # (B, S, 1)


# ----------------------- deterministic parameter init ------------------------
def init_params(key):
    ks = jax.random.split(key, 12)
    s = 0.1
    n = lambda k, shape: s * jax.random.normal(k, shape, jnp.float32)
    return dict(
        w_ih1=n(ks[0], (4 * H, F)),  w_hh1=n(ks[1], (4 * H, H)),
        b_ih1=n(ks[2], (4 * H,)),    b_hh1=n(ks[3], (4 * H,)),
        w_ih2=n(ks[4], (4 * H, H)),  w_hh2=n(ks[5], (4 * H, H)),
        b_ih2=n(ks[6], (4 * H,)),    b_hh2=n(ks[7], (4 * H,)),
        w_fc=n(ks[8], (FC, H)),      b_fc=n(ks[9], (FC,)),
        w_out=n(ks[10], (1, FC)),    b_out=n(ks[11], (1,)),
    )


# ----------------------------- pure-JAX reference ----------------------------
def reference_forward(inputs, p):
    batch, seq = inputs.shape[:2]
    x = inputs.astype(jnp.float32).reshape(batch, seq, -1)

    def layer(seq_x, w_ih, w_hh, b):
        def cell(carry, x_t):
            h, c = carry
            g = x_t @ w_ih.T + h @ w_hh.T + b
            i = jax.nn.sigmoid(g[:, :H]); f = jax.nn.sigmoid(g[:, H:2 * H])
            gg = jnp.tanh(g[:, 2 * H:3 * H]); o = jax.nn.sigmoid(g[:, 3 * H:])
            c = f * c + i * gg
            h = o * jnp.tanh(c)
            return (h, c), h
        init = (jnp.zeros((batch, H)), jnp.zeros((batch, H)))
        _, hs = jax.lax.scan(cell, init, jnp.transpose(seq_x, (1, 0, 2)))
        return jnp.transpose(hs, (1, 0, 2))

    b1 = p['b_ih1'] + p['b_hh1']
    b2 = p['b_ih2'] + p['b_hh2']
    h1 = layer(x, p['w_ih1'], p['w_hh1'], b1)
    h2 = layer(h1, p['w_ih2'], p['w_hh2'], b2)
    out = h2.reshape(batch * seq, H)
    out = jnp.maximum(out @ p['w_fc'].T + p['b_fc'], 0.0)
    out = jax.nn.sigmoid(out @ p['w_out'].T + p['b_out'])
    return out.reshape(batch, seq, 1)


if __name__ == "__main__":
    key = jax.random.PRNGKey(0)
    k_in, k_par = jax.random.split(key)
    inputs = jax.random.normal(k_in, (B, S, IMG, IMG), jnp.float32)
    params = init_params(k_par)

    out = jax.block_until_ready(mnist_rnn_forward(inputs, params))
    ref = reference_forward(inputs, params)

    assert out.shape == (B, S, 1)
    tol = 1e-5 if not USE_BF16_MXU else 2e-2
    assert jnp.allclose(out, ref, atol=tol, rtol=tol), "mismatch vs reference"
    print("KERNEL_OK")
</pallas_src>

<mosaic_0001>
module attributes {stable_mosaic.version = 11 : i64} {
  func.func @mnist_rnn_kernel(%arg0: memref<16x256xf32, #tpu.memory_space<vmem>>, %arg1: memref<258x128xf32, #tpu.memory_space<vmem>>, %arg2: memref<64x256xf32, #tpu.memory_space<vmem>>, %arg3: memref<35x16xf32, #tpu.memory_space<vmem>>, %arg4: memref<16x1xf32, #tpu.memory_space<vmem>>, %arg5: memref<16x32xf32, #tpu.memory_space<vmem>>) attributes {dimension_semantics = [], scalar_prefetch = 0 : i64, scratch_operands = 1 : i64, tpu.core_type = #tpu.core_type<tc>} {
    %c0 = arith.constant 0 : index
    %c0_0 = arith.constant 0 : index
    %0 = vector.load %arg2[%c0, %c0_0] : memref<64x256xf32, #tpu.memory_space<vmem>>, vector<64x256xf32>
    %c256 = arith.constant 256 : index
    %c0_1 = arith.constant 0 : index
    %1 = vector.load %arg1[%c256, %c0_1] : memref<258x128xf32, #tpu.memory_space<vmem>>, vector<1x128xf32>
    %c257 = arith.constant 257 : index
    %c0_2 = arith.constant 0 : index
    %2 = vector.load %arg1[%c257, %c0_2] : memref<258x128xf32, #tpu.memory_space<vmem>>, vector<1x128xf32>
    %3 = vector.shape_cast %2 : vector<1x128xf32> to vector<1x128xf32>
    %4 = vector.broadcast %3 : vector<1x128xf32> to vector<2x128xf32>
    %c0_3 = arith.constant 0 : index
    %c0_4 = arith.constant 0 : index
    %5 = vector.load %arg0[%c0_3, %c0_4] : memref<16x256xf32, #tpu.memory_space<vmem>>, vector<16x256xf32>
    %c0_5 = arith.constant 0 : index
    %c0_6 = arith.constant 0 : index
    %6 = vector.load %arg1[%c0_5, %c0_6] : memref<258x128xf32, #tpu.memory_space<vmem>>, vector<256x128xf32>
    %cst = arith.constant dense<0.000000e+00> : vector<16x128xf32>
    %7 = tpu.matmul %5, %6, %cst {dimension_numbers = #tpu.dot_dimension_numbers<[1], [0], [0], [1], [0, 0, 1, 1], [], []>} : vector<16x256xf32>, vector<256x128xf32>, vector<16x128xf32> -> vector<16x128xf32>
    %8 = vector.broadcast %1 : vector<1x128xf32> to vector<16x128xf32>
    %9 = arith.addf %7, %8 : vector<16x128xf32>
    %10 = tpu.iota {dimensions = array<i32: 1>} : vector<2x128xi32>
    %c64_i32 = arith.constant 64 : i32
    %11 = vector.broadcast %c64_i32 : i32 to vector<2x128xi32>
    %12 = arith.cmpi sge, %10, %11 : vector<2x128xi32>
    %c96_i32 = arith.constant 96 : i32
    %13 = vector.broadcast %c96_i32 : i32 to vector<2x128xi32>
    %14 = arith.cmpi slt, %10, %13 : vector<2x128xi32>
    %15 = arith.andi %12, %14 : vector<2x128xi1>
    %cst_7 = arith.constant 0.000000e+00 : f32
    %16 = vector.broadcast %cst_7 : f32 to vector<2x32xf32>
    %cst_8 = arith.constant 0.000000e+00 : f32
    %17 = vector.broadcast %cst_8 : f32 to vector<2x32xf32>
    %cst_9 = arith.constant 0.000000e+00 : f32
    %18 = vector.broadcast %cst_9 : f32 to vector<2x32xf32>
    %19 = vector.extract_strided_slice %9 {offsets = [0, 0], sizes = [2, 128], strides = [1, 1]} : vector<16x128xf32> to vector<2x128xf32>
    %20 = math.tanh %19 : vector<2x128xf32>
    %21 = arith.negf %19 : vector<2x128xf32>
    %22 = math.exp %21 : vector<2x128xf32>
    %cst_10 = arith.constant 1.000000e+00 : f32
    %23 = vector.broadcast %cst_10 : f32 to vector<2x128xf32>
    %24 = arith.addf %23, %22 : vector<2x128xf32>
    %25 = arith.divf %23, %24 : vector<2x128xf32>
    %26 = arith.select %15, %20, %25 : vector<2x128xi1>, vector<2x128xf32>
    %27 = vector.extract_strided_slice %26 {offsets = [0, 0], sizes = [2, 32], strides = [1, 1]} : vector<2x128xf32> to vector<2x32xf32>
    %28 = vector.extract_strided_slice %26 {offsets = [0, 32], sizes = [2, 32], strides = [1, 1]} : vector<2x128xf32> to vector<2x32xf32>
    %29 = vector.extract_strided_slice %26 {offsets = [0, 64], sizes = [2, 32], strides = [1, 1]} : vector<2x128xf32> to vector<2x32xf32>
    %30 = vector.extract_strided_slice %26 {offsets = [0, 96], sizes = [2, 32], strides = [1, 1]} : vector<2x128xf32> to vector<2x32xf32>
    %31 = arith.mulf %28, %17 : vector<2x32xf32>
    %32 = arith.mulf %27, %29 : vector<2x32xf32>
    %33 = arith.addf %31, %32 : vector<2x32xf32>
    %34 = math.tanh %33 : vector<2x32xf32>
    %35 = arith.mulf %30, %34 : vector<2x32xf32>
    %36 = tpu.concatenate %35, %16 in 1 : vector<2x32xf32>, vector<2x32xf32> -> vector<2x64xf32>
    %cst_11 = arith.constant dense<0.000000e+00> : vector<2x256xf32>
    %37 = tpu.matmul %36, %0, %cst_11 {dimension_numbers = #tpu.dot_dimension_numbers<[1], [0], [0], [1], [0, 0, 1, 1], [], []>} : vector<2x64xf32>, vector<64x256xf32>, vector<2x256xf32> -> vector<2x256xf32>
    %38 = vector.extract_strided_slice %37 {offsets = [0, 128], sizes = [2, 128], strides = [1, 1]} : vector<2x256xf32> to vector<2x128xf32>
    %39 = vector.extract_strided_slice %37 {offsets = [0, 0], sizes = [2, 128], strides = [1, 1]} : vector<2x256xf32> to vector<2x128xf32>
    %40 = arith.addf %39, %4 : vector<2x128xf32>
    %41 = math.tanh %40 : vector<2x128xf32>
    %42 = arith.negf %40 : vector<2x128xf32>
    %43 = math.exp %42 : vector<2x128xf32>
    %cst_12 = arith.constant 1.000000e+00 : f32
    %44 = vector.broadcast %cst_12 : f32 to vector<2x128xf32>
    %45 = arith.addf %44, %43 : vector<2x128xf32>
    %46 = arith.divf %44, %45 : vector<2x128xf32>
    %47 = arith.select %15, %41, %46 : vector<2x128xi1>, vector<2x128xf32>
    %48 = vector.extract_strided_slice %47 {offsets = [0, 0], sizes = [2, 32], strides = [1, 1]} : vector<2x128xf32> to vector<2x32xf32>
    %49 = vector.extract_strided_slice %47 {offsets = [0, 32], sizes = [2, 32], strides = [1, 1]} : vector<2x128xf32> to vector<2x32xf32>
    %50 = vector.extract_strided_slice %47 {offsets = [0, 64], sizes = [2, 32], strides = [1, 1]} : vector<2x128xf32> to vector<2x32xf32>
    %51 = vector.extract_strided_slice %47 {offsets = [0, 96], sizes = [2, 32], strides = [1, 1]} : vector<2x128xf32> to vector<2x32xf32>
    %52 = arith.mulf %49, %18 : vector<2x32xf32>
    %53 = arith.mulf %48, %50 : vector<2x32xf32>
    %54 = arith.addf %52, %53 : vector<2x32xf32>
    %55 = math.tanh %54 : vector<2x32xf32>
    %56 = arith.mulf %51, %55 : vector<2x32xf32>
    %c0_13 = arith.constant 0 : index
    %c0_14 = arith.constant 0 : index
    %57 = vector.load %arg5[%c0_13, %c0_14] : memref<16x32xf32, #tpu.memory_space<vmem>>, vector<2x32xf32>
    tpu.vector_store %arg5[%c0_13, %c0_14], %56 {strides = array<i32>} : memref<16x32xf32, #tpu.memory_space<vmem>>, vector<2x32xf32>,
    %58 = vector.extract_strided_slice %9 {offsets = [2, 0], sizes = [2, 128], strides = [1, 1]} : vector<16x128xf32> to vector<2x128xf32>
    %59 = arith.addf %58, %38 : vector<2x128xf32>
    %60 = math.tanh %59 : vector<2x128xf32>
    %61 = arith.negf %59 : vector<2x128xf32>
    %62 = math.exp %61 : vector<2x128xf32>
    %cst_15 = arith.constant 1.000000e+00 : f32
    %63 = vector.broadcast %cst_15 : f32 to vector<2x128xf32>
    %64 = arith.addf %63, %62 : vector<2x128xf32>
    %65 = arith.divf %63, %64 : vector<2x128xf32>
    %66 = arith.select %15, %60, %65 : vector<2x128xi1>, vector<2x128xf32>
    %67 = vector.extract_strided_slice %66 {offsets = [0, 0], sizes = [2, 32], strides = [1, 1]} : vector<2x128xf32> to vector<2x32xf32>
    %68 = vector.extract_strided_slice %66 {offsets = [0, 32], sizes = [2, 32], strides = [1, 1]} : vector<2x128xf32> to vector<2x32xf32>
    %69 = vector.extract_strided_slice %66 {offsets = [0, 64], sizes = [2, 32], strides = [1, 1]} : vector<2x128xf32> to vector<2x32xf32>
    %70 = vector.extract_strided_slice %66 {offsets = [0, 96], sizes = [2, 32], strides = [1, 1]} : vector<2x128xf32> to vector<2x32xf32>
    %71 = arith.mulf %68, %33 : vector<2x32xf32>
    %72 = arith.mulf %67, %69 : vector<2x32xf32>
    %73 = arith.addf %71, %72 : vector<2x32xf32>
    %74 = math.tanh %73 : vector<2x32xf32>
    %75 = arith.mulf %70, %74 : vector<2x32xf32>
    %76 = tpu.concatenate %75, %56 in 1 : vector<2x32xf32>, vector<2x32xf32> -> vector<2x64xf32>
    %cst_16 = arith.constant dense<0.000000e+00> : vector<2x256xf32>
    %77 = tpu.matmul %76, %0, %cst_16 {dimension_numbers = #tpu.dot_dimension_numbers<[1], [0], [0], [1], [0, 0, 1, 1], [], []>} : vector<2x64xf32>, vector<64x256xf32>, vector<2x256xf32> -> vector<2x256xf32>
    %78 = vector.extract_strided_slice %77 {offsets = [0, 128], sizes = [2, 128], strides = [1, 1]} : vector<2x256xf32> to vector<2x128xf32>
    %79 = vector.extract_strided_slice %77 {offsets = [0, 0], sizes = [2, 128], strides = [1, 1]} : vector<2x256xf32> to vector<2x128xf32>
    %80 = arith.addf %79, %4 : vector<2x128xf32>
    %81 = math.tanh %80 : vector<2x128xf32>
    %82 = arith.negf %80 : vector<2x128xf32>
    %83 = math.exp %82 : vector<2x128xf32>
    %cst_17 = arith.constant 1.000000e+00 : f32
    %84 = vector.broadcast %cst_17 : f32 to vector<2x128xf32>
    %85 = arith.addf %84, %83 : vector<2x128xf32>
    %86 = arith.divf %84, %85 : vector<2x128xf32>
    %87 = arith.select %15, %81, %86 : vector<2x128xi1>, vector<2x128xf32>
    %88 = vector.extract_strided_slice %87 {offsets = [0, 0], sizes = [2, 32], strides = [1, 1]} : vector<2x128xf32> to vector<2x32xf32>
    %89 = vector.extract_strided_slice %87 {offsets = [0, 32], sizes = [2, 32], strides = [1, 1]} : vector<2x128xf32> to vector<2x32xf32>
    %90 = vector.extract_strided_slice %87 {offsets = [0, 64], sizes = [2, 32], strides = [1, 1]} : vector<2x128xf32> to vector<2x32xf32>
    %91 = vector.extract_strided_slice %87 {offsets = [0, 96], sizes = [2, 32], strides = [1, 1]} : vector<2x128xf32> to vector<2x32xf32>
    %92 = arith.mulf %89, %54 : vector<2x32xf32>
    %93 = arith.mulf %88, %90 : vector<2x32xf32>
    %94 = arith.addf %92, %93 : vector<2x32xf32>
    %95 = math.tanh %94 : vector<2x32xf32>
    %96 = arith.mulf %91, %95 : vector<2x32xf32>
    %c2 = arith.constant 2 : index
    %c0_18 = arith.constant 0 : index
    %97 = vector.load %arg5[%c2, %c0_18] : memref<16x32xf32, #tpu.memory_space<vmem>>, vector<2x32xf32>
    tpu.vector_store %arg5[%c2, %c0_18], %96 {strides = array<i32>} : memref<16x32xf32, #tpu.memory_space<vmem>>, vector<2x32xf32>,
    %98 = vector.extract_strided_slice %9 {offsets = [4, 0], sizes = [2, 128], strides = [1, 1]} : vector<16x128xf32> to vector<2x128xf32>
    %99 = arith.addf %98, %78 : vector<2x128xf32>
    %100 = math.tanh %99 : vector<2x128xf32>
    %101 = arith.negf %99 : vector<2x128xf32>
    %102 = math.exp %101 : vector<2x128xf32>
    %cst_19 = arith.constant 1.000000e+00 : f32
    %103 = vector.broadcast %cst_19 : f32 to vector<2x128xf32>
    %104 = arith.addf %103, %102 : vector<2x128xf32>
    %105 = arith.divf %103, %104 : vector<2x128xf32>
    %106 = arith.select %15, %100, %105 : vector<2x128xi1>, vector<2x128xf32>
    %107 = vector.extract_strided_slice %106 {offsets = [0, 0], sizes = [2, 32], strides = [1, 1]} : vector<2x128xf32> to vector<2x32xf32>
    %108 = vector.extract_strided_slice %106 {offsets = [0, 32], sizes = [2, 32], strides = [1, 1]} : vector<2x128xf32> to vector<2x32xf32>
    %109 = vector.extract_strided_slice %106 {offsets = [0, 64], sizes = [2, 32], strides = [1, 1]} : vector<2x128xf32> to vector<2x32xf32>
    %110 = vector.extract_strided_slice %106 {offsets = [0, 96], sizes = [2, 32], strides = [1, 1]} : vector<2x128xf32> to vector<2x32xf32>
    %111 = arith.mulf %108, %73 : vector<2x32xf32>
    %112 = arith.mulf %107, %109 : vector<2x32xf32>
    %113 = arith.addf %111, %112 : vector<2x32xf32>
    %114 = math.tanh %113 : vector<2x32xf32>
    %115 = arith.mulf %110, %114 : vector<2x32xf32>
    %116 = tpu.concatenate %115, %96 in 1 : vector<2x32xf32>, vector<2x32xf32> -> vector<2x64xf32>
    %cst_20 = arith.constant dense<0.000000e+00> : vector<2x256xf32>
    %117 = tpu.matmul %116, %0, %cst_20 {dimension_numbers = #tpu.dot_dimension_numbers<[1], [0], [0], [1], [0, 0, 1, 1], [], []>} : vector<2x64xf32>, vector<64x256xf32>, vector<2x256xf32> -> vector<2x256xf32>
    %118 = vector.extract_strided_slice %117 {offsets = [0, 128], sizes = [2, 128], strides = [1, 1]} : vector<2x256xf32> to vector<2x128xf32>
    %119 = vector.extract_strided_slice %117 {offsets = [0, 0], sizes = [2, 128], strides = [1, 1]} : vector<2x256xf32> to vector<2x128xf32>
    %120 = arith.addf %119, %4 : vector<2x128xf32>
    %121 = math.tanh %120 : vector<2x128xf32>
    %122 = arith.negf %120 : vector<2x128xf32>
    %123 = math.exp %122 : vector<2x128xf32>
    %cst_21 = arith.constant 1.000000e+00 : f32
    %124 = vector.broadcast %cst_21 : f32 to vector<2x128xf32>
    %125 = arith.addf %124, %123 : vector<2x128xf32>
    %126 = arith.divf %124, %125 : vector<2x128xf32>
    %127 = arith.select %15, %121, %126 : vector<2x128xi1>, vector<2x128xf32>
    %128 = vector.extract_strided_slice %127 {offsets = [0, 0], sizes = [2, 32], strides = [1, 1]} : vector<2x128xf32> to vector<2x32xf32>
    %129 = vector.extract_strided_slice %127 {offsets = [0, 32], sizes = [2, 32], strides = [1, 1]} : vector<2x128xf32> to vector<2x32xf32>
    %130 = vector.extract_strided_slice %127 {offsets = [0, 64], sizes = [2, 32], strides = [1, 1]} : vector<2x128xf32> to vector<2x32xf32>
    %131 = vector.extract_strided_slice %127 {offsets = [0, 96], sizes = [2, 32], strides = [1, 1]} : vector<2x128xf32> to vector<2x32xf32>
    %132 = arith.mulf %129, %94 : vector<2x32xf32>
    %133 = arith.mulf %128, %130 : vector<2x32xf32>
    %134 = arith.addf %132, %133 : vector<2x32xf32>
    %135 = math.tanh %134 : vector<2x32xf32>
    %136 = arith.mulf %131, %135 : vector<2x32xf32>
    %c4 = arith.constant 4 : index
    %c0_22 = arith.constant 0 : index
    %137 = vector.load %arg5[%c4, %c0_22] : memref<16x32xf32, #tpu.memory_space<vmem>>, vector<2x32xf32>
    tpu.vector_store %arg5[%c4, %c0_22], %136 {strides = array<i32>} : memref<16x32xf32, #tpu.memory_space<vmem>>, vector<2x32xf32>,
    %138 = vector.extract_strided_slice %9 {offsets = [6, 0], sizes = [2, 128], strides = [1, 1]} : vector<16x128xf32> to vector<2x128xf32>
    %139 = arith.addf %138, %118 : vector<2x128xf32>
    %140 = math.tanh %139 : vector<2x128xf32>
    %141 = arith.negf %139 : vector<2x128xf32>
    %142 = math.exp %141 : vector<2x128xf32>
    %cst_23 = arith.constant 1.000000e+00 : f32
    %143 = vector.broadcast %cst_23 : f32 to vector<2x128xf32>
    %144 = arith.addf %143, %142 : vector<2x128xf32>
    %145 = arith.divf %143, %144 : vector<2x128xf32>
    %146 = arith.select %15, %140, %145 : vector<2x128xi1>, vector<2x128xf32>
    %147 = vector.extract_strided_slice %146 {offsets = [0, 0], sizes = [2, 32], strides = [1, 1]} : vector<2x128xf32> to vector<2x32xf32>
    %148 = vector.extract_strided_slice %146 {offsets = [0, 32], sizes = [2, 32], strides = [1, 1]} : vector<2x128xf32> to vector<2x32xf32>
    %149 = vector.extract_strided_slice %146 {offsets = [0, 64], sizes = [2, 32], strides = [1, 1]} : vector<2x128xf32> to vector<2x32xf32>
    %150 = vector.extract_strided_slice %146 {offsets = [0, 96], sizes = [2, 32], strides = [1, 1]} : vector<2x128xf32> to vector<2x32xf32>
    %151 = arith.mulf %148, %113 : vector<2x32xf32>
    %152 = arith.mulf %147, %149 : vector<2x32xf32>
    %153 = arith.addf %151, %152 : vector<2x32xf32>
    %154 = math.tanh %153 : vector<2x32xf32>
    %155 = arith.mulf %150, %154 : vector<2x32xf32>
    %156 = tpu.concatenate %155, %136 in 1 : vector<2x32xf32>, vector<2x32xf32> -> vector<2x64xf32>
    %cst_24 = arith.constant dense<0.000000e+00> : vector<2x256xf32>
    %157 = tpu.matmul %156, %0, %cst_24 {dimension_numbers = #tpu.dot_dimension_numbers<[1], [0], [0], [1], [0, 0, 1, 1], [], []>} : vector<2x64xf32>, vector<64x256xf32>, vector<2x256xf32> -> vector<2x256xf32>
    %158 = vector.extract_strided_slice %157 {offsets = [0, 128], sizes = [2, 128], strides = [1, 1]} : vector<2x256xf32> to vector<2x128xf32>
    %159 = vector.extract_strided_slice %157 {offsets = [0, 0], sizes = [2, 128], strides = [1, 1]} : vector<2x256xf32> to vector<2x128xf32>
    %160 = arith.addf %159, %4 : vector<2x128xf32>
    %161 = math.tanh %160 : vector<2x128xf32>
    %162 = arith.negf %160 : vector<2x128xf32>
    %163 = math.exp %162 : vector<2x128xf32>
    %cst_25 = arith.constant 1.000000e+00 : f32
    %164 = vector.broadcast %cst_25 : f32 to vector<2x128xf32>
    %165 = arith.addf %164, %163 : vector<2x128xf32>
    %166 = arith.divf %164, %165 : vector<2x128xf32>
    %167 = arith.select %15, %161, %166 : vector<2x128xi1>, vector<2x128xf32>
    %168 = vector.extract_strided_slice %167 {offsets = [0, 0], sizes = [2, 32], strides = [1, 1]} : vector<2x128xf32> to vector<2x32xf32>
    %169 = vector.extract_strided_slice %167 {offsets = [0, 32], sizes = [2, 32], strides = [1, 1]} : vector<2x128xf32> to vector<2x32xf32>
    %170 = vector.extract_strided_slice %167 {offsets = [0, 64], sizes = [2, 32], strides = [1, 1]} : vector<2x128xf32> to vector<2x32xf32>
    %171 = vector.extract_strided_slice %167 {offsets = [0, 96], sizes = [2, 32], strides = [1, 1]} : vector<2x128xf32> to vector<2x32xf32>
    %172 = arith.mulf %169, %134 : vector<2x32xf32>
    %173 = arith.mulf %168, %170 : vector<2x32xf32>
    %174 = arith.addf %172, %173 : vector<2x32xf32>
    %175 = math.tanh %174 : vector<2x32xf32>
    %176 = arith.mulf %171, %175 : vector<2x32xf32>
    %c6 = arith.constant 6 : index
    %c0_26 = arith.constant 0 : index
    %177 = vector.load %arg5[%c6, %c0_26] : memref<16x32xf32, #tpu.memory_space<vmem>>, vector<2x32xf32>
    tpu.vector_store %arg5[%c6, %c0_26], %176 {strides = array<i32>} : memref<16x32xf32, #tpu.memory_space<vmem>>, vector<2x32xf32>,
    %178 = vector.extract_strided_slice %9 {offsets = [8, 0], sizes = [2, 128], strides = [1, 1]} : vector<16x128xf32> to vector<2x128xf32>
    %179 = arith.addf %178, %158 : vector<2x128xf32>
    %180 = math.tanh %179 : vector<2x128xf32>
    %181 = arith.negf %179 : vector<2x128xf32>
    %182 = math.exp %181 : vector<2x128xf32>
    %cst_27 = arith.constant 1.000000e+00 : f32
    %183 = vector.broadcast %cst_27 : f32 to vector<2x128xf32>
    %184 = arith.addf %183, %182 : vector<2x128xf32>
    %185 = arith.divf %183, %184 : vector<2x128xf32>
    %186 = arith.select %15, %180, %185 : vector<2x128xi1>, vector<2x128xf32>
    %187 = vector.extract_strided_slice %186 {offsets = [0, 0], sizes = [2, 32], strides = [1, 1]} : vector<2x128xf32> to vector<2x32xf32>
    %188 = vector.extract_strided_slice %186 {offsets = [0, 32], sizes = [2, 32], strides = [1, 1]} : vector<2x128xf32> to vector<2x32xf32>
    %189 = vector.extract_strided_slice %186 {offsets = [0, 64], sizes = [2, 32], strides = [1, 1]} : vector<2x128xf32> to vector<2x32xf32>
    %190 = vector.extract_strided_slice %186 {offsets = [0, 96], sizes = [2, 32], strides = [1, 1]} : vector<2x128xf32> to vector<2x32xf32>
    %191 = arith.mulf %188, %153 : vector<2x32xf32>
    %192 = arith.mulf %187, %189 : vector<2x32xf32>
    %193 = arith.addf %191, %192 : vector<2x32xf32>
    %194 = math.tanh %193 : vector<2x32xf32>
    %195 = arith.mulf %190, %194 : vector<2x32xf32>
    %196 = tpu.concatenate %195, %176 in 1 : vector<2x32xf32>, vector<2x32xf32> -> vector<2x64xf32>
    %cst_28 = arith.constant dense<0.000000e+00> : vector<2x256xf32>
    %197 = tpu.matmul %196, %0, %cst_28 {dimension_numbers = #tpu.dot_dimension_numbers<[1], [0], [0], [1], [0, 0, 1, 1], [], []>} : vector<2x64xf32>, vector<64x256xf32>, vector<2x256xf32> -> vector<2x256xf32>
    %198 = vector.extract_strided_slice %197 {offsets = [0, 128], sizes = [2, 128], strides = [1, 1]} : vector<2x256xf32> to vector<2x128xf32>
    %199 = vector.extract_strided_slice %197 {offsets = [0, 0], sizes = [2, 128], strides = [1, 1]} : vector<2x256xf32> to vector<2x128xf32>
    %200 = arith.addf %199, %4 : vector<2x128xf32>
    %201 = math.tanh %200 : vector<2x128xf32>
    %202 = arith.negf %200 : vector<2x128xf32>
    %203 = math.exp %202 : vector<2x128xf32>
    %cst_29 = arith.constant 1.000000e+00 : f32
    %204 = vector.broadcast %cst_29 : f32 to vector<2x128xf32>
    %205 = arith.addf %204, %203 : vector<2x128xf32>
    %206 = arith.divf %204, %205 : vector<2x128xf32>
    %207 = arith.select %15, %201, %206 : vector<2x128xi1>, vector<2x128xf32>
    %208 = vector.extract_strided_slice %207 {offsets = [0, 0], sizes = [2, 32], strides = [1, 1]} : vector<2x128xf32> to vector<2x32xf32>
    %209 = vector.extract_strided_slice %207 {offsets = [0, 32], sizes = [2, 32], strides = [1, 1]} : vector<2x128xf32> to vector<2x32xf32>
    %210 = vector.extract_strided_slice %207 {offsets = [0, 64], sizes = [2, 32], strides = [1, 1]} : vector<2x128xf32> to vector<2x32xf32>
    %211 = vector.extract_strided_slice %207 {offsets = [0, 96], sizes = [2, 32], strides = [1, 1]} : vector<2x128xf32> to vector<2x32xf32>
    %212 = arith.mulf %209, %174 : vector<2x32xf32>
    %213 = arith.mulf %208, %210 : vector<2x32xf32>
    %214 = arith.addf %212, %213 : vector<2x32xf32>
    %215 = math.tanh %214 : vector<2x32xf32>
    %216 = arith.mulf %211, %215 : vector<2x32xf32>
    %c8 = arith.constant 8 : index
    %c0_30 = arith.constant 0 : index
    %217 = vector.load %arg5[%c8, %c0_30] : memref<16x32xf32, #tpu.memory_space<vmem>>, vector<2x32xf32>
    tpu.vector_store %arg5[%c8, %c0_30], %216 {strides = array<i32>} : memref<16x32xf32, #tpu.memory_space<vmem>>, vector<2x32xf32>,
    %218 = vector.extract_strided_slice %9 {offsets = [10, 0], sizes = [2, 128], strides = [1, 1]} : vector<16x128xf32> to vector<2x128xf32>
    %219 = arith.addf %218, %198 : vector<2x128xf32>
    %220 = math.tanh %219 : vector<2x128xf32>
    %221 = arith.negf %219 : vector<2x128xf32>
    %222 = math.exp %221 : vector<2x128xf32>
    %cst_31 = arith.constant 1.000000e+00 : f32
    %223 = vector.broadcast %cst_31 : f32 to vector<2x128xf32>
    %224 = arith.addf %223, %222 : vector<2x128xf32>
    %225 = arith.divf %223, %224 : vector<2x128xf32>
    %226 = arith.select %15, %220, %225 : vector<2x128xi1>, vector<2x128xf32>
    %227 = vector.extract_strided_slice %226 {offsets = [0, 0], sizes = [2, 32], strides = [1, 1]} : vector<2x128xf32> to vector<2x32xf32>
    %228 = vector.extract_strided_slice %226 {offsets = [0, 32], sizes = [2, 32], strides = [1, 1]} : vector<2x128xf32> to vector<2x32xf32>
    %229 = vector.extract_strided_slice %226 {offsets = [0, 64], sizes = [2, 32], strides = [1, 1]} : vector<2x128xf32> to vector<2x32xf32>
    %230 = vector.extract_strided_slice %226 {offsets = [0, 96], sizes = [2, 32], strides = [1, 1]} : vector<2x128xf32> to vector<2x32xf32>
    %231 = arith.mulf %228, %193 : vector<2x32xf32>
    %232 = arith.mulf %227, %229 : vector<2x32xf32>
    %233 = arith.addf %231, %232 : vector<2x32xf32>
    %234 = math.tanh %233 : vector<2x32xf32>
    %235 = arith.mulf %230, %234 : vector<2x32xf32>
    %236 = tpu.concatenate %235, %216 in 1 : vector<2x32xf32>, vector<2x32xf32> -> vector<2x64xf32>
    %cst_32 = arith.constant dense<0.000000e+00> : vector<2x256xf32>
    %237 = tpu.matmul %236, %0, %cst_32 {dimension_numbers = #tpu.dot_dimension_numbers<[1], [0], [0], [1], [0, 0, 1, 1], [], []>} : vector<2x64xf32>, vector<64x256xf32>, vector<2x256xf32> -> vector<2x256xf32>
    %238 = vector.extract_strided_slice %237 {offsets = [0, 128], sizes = [2, 128], strides = [1, 1]} : vector<2x256xf32> to vector<2x128xf32>
    %239 = vector.extract_strided_slice %237 {offsets = [0, 0], sizes = [2, 128], strides = [1, 1]} : vector<2x256xf32> to vector<2x128xf32>
    %240 = arith.addf %239, %4 : vector<2x128xf32>
    %241 = math.tanh %240 : vector<2x128xf32>
    %242 = arith.negf %240 : vector<2x128xf32>
    %243 = math.exp %242 : vector<2x128xf32>
    %cst_33 = arith.constant 1.000000e+00 : f32
    %244 = vector.broadcast %cst_33 : f32 to vector<2x128xf32>
    %245 = arith.addf %244, %243 : vector<2x128xf32>
    %246 = arith.divf %244, %245 : vector<2x128xf32>
    %247 = arith.select %15, %241, %246 : vector<2x128xi1>, vector<2x128xf32>
    %248 = vector.extract_strided_slice %247 {offsets = [0, 0], sizes = [2, 32], strides = [1, 1]} : vector<2x128xf32> to vector<2x32xf32>
    %249 = vector.extract_strided_slice %247 {offsets = [0, 32], sizes = [2, 32], strides = [1, 1]} : vector<2x128xf32> to vector<2x32xf32>
    %250 = vector.extract_strided_slice %247 {offsets = [0, 64], sizes = [2, 32], strides = [1, 1]} : vector<2x128xf32> to vector<2x32xf32>
    %251 = vector.extract_strided_slice %247 {offsets = [0, 96], sizes = [2, 32], strides = [1, 1]} : vector<2x128xf32> to vector<2x32xf32>
    %252 = arith.mulf %249, %214 : vector<2x32xf32>
    %253 = arith.mulf %248, %250 : vector<2x32xf32>
    %254 = arith.addf %252, %253 : vector<2x32xf32>
    %255 = math.tanh %254 : vector<2x32xf32>
    %256 = arith.mulf %251, %255 : vector<2x32xf32>
    %c10 = arith.constant 10 : index
    %c0_34 = arith.constant 0 : index
    %257 = vector.load %arg5[%c10, %c0_34] : memref<16x32xf32, #tpu.memory_space<vmem>>, vector<2x32xf32>
    tpu.vector_store %arg5[%c10, %c0_34], %256 {strides = array<i32>} : memref<16x32xf32, #tpu.memory_space<vmem>>, vector<2x32xf32>,
    %258 = vector.extract_strided_slice %9 {offsets = [12, 0], sizes = [2, 128], strides = [1, 1]} : vector<16x128xf32> to vector<2x128xf32>
    %259 = arith.addf %258, %238 : vector<2x128xf32>
    %260 = math.tanh %259 : vector<2x128xf32>
    %261 = arith.negf %259 : vector<2x128xf32>
    %262 = math.exp %261 : vector<2x128xf32>
    %cst_35 = arith.constant 1.000000e+00 : f32
    %263 = vector.broadcast %cst_35 : f32 to vector<2x128xf32>
    %264 = arith.addf %263, %262 : vector<2x128xf32>
    %265 = arith.divf %263, %264 : vector<2x128xf32>
    %266 = arith.select %15, %260, %265 : vector<2x128xi1>, vector<2x128xf32>
    %267 = vector.extract_strided_slice %266 {offsets = [0, 0], sizes = [2, 32], strides = [1, 1]} : vector<2x128xf32> to vector<2x32xf32>
    %268 = vector.extract_strided_slice %266 {offsets = [0, 32], sizes = [2, 32], strides = [1, 1]} : vector<2x128xf32> to vector<2x32xf32>
    %269 = vector.extract_strided_slice %266 {offsets = [0, 64], sizes = [2, 32], strides = [1, 1]} : vector<2x128xf32> to vector<2x32xf32>
    %270 = vector.extract_strided_slice %266 {offsets = [0, 96], sizes = [2, 32], strides = [1, 1]} : vector<2x128xf32> to vector<2x32xf32>
    %271 = arith.mulf %268, %233 : vector<2x32xf32>
    %272 = arith.mulf %267, %269 : vector<2x32xf32>
    %273 = arith.addf %271, %272 : vector<2x32xf32>
    %274 = math.tanh %273 : vector<2x32xf32>
    %275 = arith.mulf %270, %274 : vector<2x32xf32>
    %276 = tpu.concatenate %275, %256 in 1 : vector<2x32xf32>, vector<2x32xf32> -> vector<2x64xf32>
    %cst_36 = arith.constant dense<0.000000e+00> : vector<2x256xf32>
    %277 = tpu.matmul %276, %0, %cst_36 {dimension_numbers = #tpu.dot_dimension_numbers<[1], [0], [0], [1], [0, 0, 1, 1], [], []>} : vector<2x64xf32>, vector<64x256xf32>, vector<2x256xf32> -> vector<2x256xf32>
    %278 = vector.extract_strided_slice %277 {offsets = [0, 128], sizes = [2, 128], strides = [1, 1]} : vector<2x256xf32> to vector<2x128xf32>
    %279 = vector.extract_strided_slice %277 {offsets = [0, 0], sizes = [2, 128], strides = [1, 1]} : vector<2x256xf32> to vector<2x128xf32>
    %280 = arith.addf %279, %4 : vector<2x128xf32>
    %281 = math.tanh %280 : vector<2x128xf32>
    %282 = arith.negf %280 : vector<2x128xf32>
    %283 = math.exp %282 : vector<2x128xf32>
    %cst_37 = arith.constant 1.000000e+00 : f32
    %284 = vector.broadcast %cst_37 : f32 to vector<2x128xf32>
    %285 = arith.addf %284, %283 : vector<2x128xf32>
    %286 = arith.divf %284, %285 : vector<2x128xf32>
    %287 = arith.select %15, %281, %286 : vector<2x128xi1>, vector<2x128xf32>
    %288 = vector.extract_strided_slice %287 {offsets = [0, 0], sizes = [2, 32], strides = [1, 1]} : vector<2x128xf32> to vector<2x32xf32>
    %289 = vector.extract_strided_slice %287 {offsets = [0, 32], sizes = [2, 32], strides = [1, 1]} : vector<2x128xf32> to vector<2x32xf32>
    %290 = vector.extract_strided_slice %287 {offsets = [0, 64], sizes = [2, 32], strides = [1, 1]} : vector<2x128xf32> to vector<2x32xf32>
    %291 = vector.extract_strided_slice %287 {offsets = [0, 96], sizes = [2, 32], strides = [1, 1]} : vector<2x128xf32> to vector<2x32xf32>
    %292 = arith.mulf %289, %254 : vector<2x32xf32>
    %293 = arith.mulf %288, %290 : vector<2x32xf32>
    %294 = arith.addf %292, %293 : vector<2x32xf32>
    %295 = math.tanh %294 : vector<2x32xf32>
    %296 = arith.mulf %291, %295 : vector<2x32xf32>
    %c12 = arith.constant 12 : index
    %c0_38 = arith.constant 0 : index
    %297 = vector.load %arg5[%c12, %c0_38] : memref<16x32xf32, #tpu.memory_space<vmem>>, vector<2x32xf32>
    tpu.vector_store %arg5[%c12, %c0_38], %296 {strides = array<i32>} : memref<16x32xf32, #tpu.memory_space<vmem>>, vector<2x32xf32>,
    %298 = vector.extract_strided_slice %9 {offsets = [14, 0], sizes = [2, 128], strides = [1, 1]} : vector<16x128xf32> to vector<2x128xf32>
    %299 = arith.addf %298, %278 : vector<2x128xf32>
    %300 = math.tanh %299 : vector<2x128xf32>
    %301 = arith.negf %299 : vector<2x128xf32>
    %302 = math.exp %301 : vector<2x128xf32>
    %cst_39 = arith.constant 1.000000e+00 : f32
    %303 = vector.broadcast %cst_39 : f32 to vector<2x128xf32>
    %304 = arith.addf %303, %302 : vector<2x128xf32>
    %305 = arith.divf %303, %304 : vector<2x128xf32>
    %306 = arith.select %15, %300, %305 : vector<2x128xi1>, vector<2x128xf32>
    %307 = vector.extract_strided_slice %306 {offsets = [0, 0], sizes = [2, 32], strides = [1, 1]} : vector<2x128xf32> to vector<2x32xf32>
    %308 = vector.extract_strided_slice %306 {offsets = [0, 32], sizes = [2, 32], strides = [1, 1]} : vector<2x128xf32> to vector<2x32xf32>
    %309 = vector.extract_strided_slice %306 {offsets = [0, 64], sizes = [2, 32], strides = [1, 1]} : vector<2x128xf32> to vector<2x32xf32>
    %310 = vector.extract_strided_slice %306 {offsets = [0, 96], sizes = [2, 32], strides = [1, 1]} : vector<2x128xf32> to vector<2x32xf32>
    %311 = arith.mulf %308, %273 : vector<2x32xf32>
    %312 = arith.mulf %307, %309 : vector<2x32xf32>
    %313 = arith.addf %311, %312 : vector<2x32xf32>
    %314 = math.tanh %313 : vector<2x32xf32>
    %315 = arith.mulf %310, %314 : vector<2x32xf32>
    %316 = tpu.concatenate %315, %296 in 1 : vector<2x32xf32>, vector<2x32xf32> -> vector<2x64xf32>
    %cst_40 = arith.constant dense<0.000000e+00> : vector<2x256xf32>
    %317 = tpu.matmul %316, %0, %cst_40 {dimension_numbers = #tpu.dot_dimension_numbers<[1], [0], [0], [1], [0, 0, 1, 1], [], []>} : vector<2x64xf32>, vector<64x256xf32>, vector<2x256xf32> -> vector<2x256xf32>
    %318 = vector.extract_strided_slice %317 {offsets = [0, 0], sizes = [2, 128], strides = [1, 1]} : vector<2x256xf32> to vector<2x128xf32>
    %319 = arith.addf %318, %4 : vector<2x128xf32>
    %320 = math.tanh %319 : vector<2x128xf32>
    %321 = arith.negf %319 : vector<2x128xf32>
    %322 = math.exp %321 : vector<2x128xf32>
    %cst_41 = arith.constant 1.000000e+00 : f32
    %323 = vector.broadcast %cst_41 : f32 to vector<2x128xf32>
    %324 = arith.addf %323, %322 : vector<2x128xf32>
    %325 = arith.divf %323, %324 : vector<2x128xf32>
    %326 = arith.select %15, %320, %325 : vector<2x128xi1>, vector<2x128xf32>
    %327 = vector.extract_strided_slice %326 {offsets = [0, 0], sizes = [2, 32], strides = [1, 1]} : vector<2x128xf32> to vector<2x32xf32>
    %328 = vector.extract_strided_slice %326 {offsets = [0, 32], sizes = [2, 32], strides = [1, 1]} : vector<2x128xf32> to vector<2x32xf32>
    %329 = vector.extract_strided_slice %326 {offsets = [0, 64], sizes = [2, 32], strides = [1, 1]} : vector<2x128xf32> to vector<2x32xf32>
    %330 = vector.extract_strided_slice %326 {offsets = [0, 96], sizes = [2, 32], strides = [1, 1]} : vector<2x128xf32> to vector<2x32xf32>
    %331 = arith.mulf %328, %294 : vector<2x32xf32>
    %332 = arith.mulf %327, %329 : vector<2x32xf32>
    %333 = arith.addf %331, %332 : vector<2x32xf32>
    %334 = math.tanh %333 : vector<2x32xf32>
    %335 = arith.mulf %330, %334 : vector<2x32xf32>
    %c14 = arith.constant 14 : index
    %c0_42 = arith.constant 0 : index
    %336 = vector.load %arg5[%c14, %c0_42] : memref<16x32xf32, #tpu.memory_space<vmem>>, vector<2x32xf32>
    tpu.vector_store %arg5[%c14, %c0_42], %335 {strides = array<i32>} : memref<16x32xf32, #tpu.memory_space<vmem>>, vector<2x32xf32>,
    %c0_43 = arith.constant 0 : index
    %c0_44 = arith.constant 0 : index
    %337 = vector.load %arg5[%c0_43, %c0_44] : memref<16x32xf32, #tpu.memory_space<vmem>>, vector<16x32xf32>
    %c0_45 = arith.constant 0 : index
    %c0_46 = arith.constant 0 : index
    %338 = vector.load %arg3[%c0_45, %c0_46] : memref<35x16xf32, #tpu.memory_space<vmem>>, vector<32x16xf32>
    %c32 = arith.constant 32 : index
    %c0_47 = arith.constant 0 : index
    %339 = vector.load %arg3[%c32, %c0_47] : memref<35x16xf32, #tpu.memory_space<vmem>>, vector<1x16xf32>
    %c33 = arith.constant 33 : index
    %c0_48 = arith.constant 0 : index
    %340 = vector.load %arg3[%c33, %c0_48] : memref<35x16xf32, #tpu.memory_space<vmem>>, vector<1x16xf32>
    %c34 = arith.constant 34 : index
    %c0_49 = arith.constant 0 : index
    %341 = vector.load %arg3[%c34, %c0_49] : memref<35x16xf32, #tpu.memory_space<vmem>>, vector<1x1xf32>
    %cst_50 = arith.constant dense<0.000000e+00> : vector<16x16xf32>
    %342 = tpu.matmul %337, %338, %cst_50 {dimension_numbers = #tpu.dot_dimension_numbers<[1], [0], [0], [1], [0, 0, 1, 1], [], []>} : vector<16x32xf32>, vector<32x16xf32>, vector<16x16xf32> -> vector<16x16xf32>
    %343 = vector.broadcast %339 : vector<1x16xf32> to vector<16x16xf32>
    %344 = arith.addf %342, %343 : vector<16x16xf32>
    %cst_51 = arith.constant 0.000000e+00 : f32
    %345 = vector.broadcast %cst_51 : f32 to vector<16x16xf32>
    %346 = arith.maximumf %344, %345 : vector<16x16xf32>
    %347 = vector.broadcast %340 : vector<1x16xf32> to vector<16x16xf32>
    %348 = arith.mulf %346, %347 : vector<16x16xf32>
    %cst_52 = arith.constant dense<0.000000e+00> : vector<16xf32>
    %349 = vector.multi_reduction <add>, %348, %cst_52 [1] : vector<16x16xf32> to vector<16xf32>
    %350 = vector.shape_cast %349 : vector<16xf32> to vector<16x1xf32>
    %351 = vector.broadcast %341 : vector<1x1xf32> to vector<16x1xf32>
    %352 = arith.addf %350, %351 : vector<16x1xf32>
    %353 = arith.negf %352 : vector<16x1xf32>
    %354 = math.exp %353 : vector<16x1xf32>
    %cst_53 = arith.constant 1.000000e+00 : f32
    %355 = vector.broadcast %cst_53 : f32 to vector<16x1xf32>
    %356 = arith.addf %355, %354 : vector<16x1xf32>
    %357 = arith.divf %355, %356 : vector<16x1xf32>
    %c0_54 = arith.constant 0 : index
    %c0_55 = arith.constant 0 : index
    %358 = vector.load %arg4[%c0_54, %c0_55] : memref<16x1xf32, #tpu.memory_space<vmem>>, vector<16x1xf32>
    tpu.vector_store %arg4[%c0_54, %c0_55], %357 {strides = array<i32>} : memref<16x1xf32, #tpu.memory_space<vmem>>, vector<16x1xf32>,
    return
  }
}

</mosaic_0001>

<bundles_post_ra>
// kernel: mnist_rnn_forward.1
= control target key start
LH: loop header
LB: loop body
LE: loop exit
PB: predicated region body
PF: predicated region fallthrough
CT: control target
= control target key end

     0   :  { %v119_v42 = vlaneseq  ;;  %s1504_s7 = smov 64   ;;  %s1505_s8 = smov 32   ;;  %vm166_vm7 = vcmask 261120   ;;  %vm168_vm8 = vcmask 523264   ;;  %s2128_s1 = inlined_call_operand.vmem [shape: f32[258,128], index: 1, kind: input, shape index: {}]   ;;  %s2129_s0 = inlined_call_operand.vmem [shape: f32[16,256], index: 0, kind: input, shape index: {}]   ;;  %s2130_s2 = inlined_call_operand.vmem [shape: f32[64,256], index: 2, kind: input, shape index: {}]   ;;  %s2131_s3 = inlined_call_operand.vmem [shape: f32[35,16], index: 3, kind: input, shape index: {}]   ;;  %s2132_s4 = inlined_call_operand.vmem [shape: f32[16,1], index: 4, kind: output, shape index: {}]  }
   0x1   :  { %v55_v0 = vld [vmem:[%s2128_s1 + $0x78] sm:$0xff]  ;;  %v54_v1 = vld [vmem:[%s2128_s1 + $0x70] sm:$0xff]  ;;  %v53_v4 = vld [vmem:[%s2128_s1 + $0x68] sm:$0xff] }
   0x2   :  { %v71_v2 = vld [vmem:[%s2128_s1 + $0xf8] sm:$0xff]  ;;  %73 = vmatpush.msra.mxu0 %v55_v0  ;;  %v70_v3 = vld [vmem:[%s2128_s1 + $0xf0] sm:$0xff]  ;;  %v69_v5 = vld [vmem:[%s2128_s1 + $0xe8] sm:$0xff]  ;;  %v120_v44 = vand.u32 127, %v119_v42 }
   0x3   :  { %96 = vmatpush.msra.mxu1 %v71_v2  ;;  %v52_v6 = vld [vmem:[%s2128_s1 + $0x60] sm:$0xff]  ;;  %v51_v8 = vld [vmem:[%s2128_s1 + $0x58] sm:$0xff]  ;;  %v50_v10 = vld [vmem:[%s2128_s1 + $0x50] sm:$0xff] }
   0x4   :  { %74 = vmatpush.msra.mxu0 %v54_v1  ;;  %v68_v7 = vld [vmem:[%s2128_s1 + $0xe0] sm:$0xff]  ;;  %v67_v9 = vld [vmem:[%s2128_s1 + $0xd8] sm:$0xff]  ;;  %v66_v11 = vld [vmem:[%s2128_s1 + $0xd0] sm:$0xff]  ;;  %vm121_vm0 = vcmp.ge.s32.totalorder %v120_v44, 64  ;;  %vm122_vm1 = vcmp.lt.s32.totalorder %v120_v44, 96 }
   0x5   :  { %97 = vmatpush.msra.mxu1 %v70_v3  ;;  %v49_v12 = vld [vmem:[%s2128_s1 + $0x48] sm:$0xff]  ;;  %v48_v14 = vld [vmem:[%s2128_s1 + $0x40] sm:$0xff]  ;;  %v47_v16 = vld [vmem:[%s2128_s1 + $0x38] sm:$0xff] }
   0x6   :  { %75 = vmatpush.msra.mxu0 %v53_v4  ;;  %v65_v13 = vld [vmem:[%s2128_s1 + $0xc8] sm:$0xff]  ;;  %v64_v15 = vld [vmem:[%s2128_s1 + $0xc0] sm:$0xff]  ;;  %v63_v17 = vld [vmem:[%s2128_s1 + $0xb8] sm:$0xff] }
   0x7   :  { %98 = vmatpush.msra.mxu1 %v69_v5  ;;  %v46_v18 = vld [vmem:[%s2128_s1 + $0x30] sm:$0xff]  ;;  %v45_v20 = vld [vmem:[%s2128_s1 + $0x28] sm:$0xff]  ;;  %v44_v22 = vld [vmem:[%s2128_s1 + $0x20] sm:$0xff] }
   0x8   :  { %76 = vmatpush.msra.mxu0 %v52_v6  ;;  %v62_v19 = vld [vmem:[%s2128_s1 + $0xb0] sm:$0xff]  ;;  %v61_v21 = vld [vmem:[%s2128_s1 + $0xa8] sm:$0xff]  ;;  %v60_v23 = vld [vmem:[%s2128_s1 + $0xa0] sm:$0xff] }
   0x9   :  { %99 = vmatpush.msra.mxu1 %v68_v7  ;;  %v43_v24 = vld [vmem:[%s2128_s1 + $0x18] sm:$0xff]  ;;  %v42_v26 = vld [vmem:[%s2128_s1 + $0x10] sm:$0xff]  ;;  %v41_v28 = vld [vmem:[%s2128_s1 + $0x8] sm:$0xff] }
   0xa   :  { %77 = vmatpush.msra.mxu0 %v51_v8  ;;  %v59_v25 = vld [vmem:[%s2128_s1 + $0x98] sm:$0xff]  ;;  %v58_v27 = vld [vmem:[%s2128_s1 + $0x90] sm:$0xff]  ;;  %v57_v29 = vld [vmem:[%s2128_s1 + $0x88] sm:$0xff] }
   0xb   :  { %100 = vmatpush.msra.mxu1 %v67_v9  ;;  %v40_v30 = vld [vmem:[%s2128_s1] sm:$0xff]  ;;  %v37_v33 = vld [vmem:[%s2129_s0 + $0x8] sm:$0xff]  ;;  %vm1643_vm3 = vmand %vm121_vm0, %vm122_vm1 }
   0xc   :  { %78 = vmatpush.msra.mxu0 %v50_v10  ;;  %v56_v31 = vld [vmem:[%s2128_s1 + $0x80] sm:$0xff]  ;;  %v1658_v63 = vld [vmem:[%s2130_s2 + $0x70] sm:$0xff]  ;;  %v1663_v0 = vld [vmem:[%s2130_s2 + $0x78] sm:$0xff] }
   0xd   :  { %101 = vmatpush.msra.mxu1 %v66_v11  ;;  %v36_v32 = vld [vmem:[%s2129_s0] sm:$0xff]  ;;  %180 = vmatpush.msra.mxu2 %v1658_v63  ;;  %v1675_v2 = vld [vmem:[%s2130_s2 + $0x68] sm:$0xff]  ;;  %v1680_v3 = vld [vmem:[%s2130_s2 + $0x50] sm:$0xff] }
   0xe   :  { %79 = vmatpush.msra.mxu0 %v49_v12  ;;  %v1636_v34 = vld [vmem:[%s2128_s1 + $0x100] ss:$0 sm:$0xff]  ;;  %200 = vmatpush.msra.mxu3 %v1663_v0  ;;  %v1685_v4 = vld [vmem:[%s2130_s2 + $0x58] sm:$0xff]  ;;  %v1699_v6 = vld [vmem:[%s2130_s2 + $0x48] sm:$0xff] }
   0xf   :  { %102 = vmatpush.msra.mxu1 %v65_v13  ;;  %v1668_v1 = vld [vmem:[%s2130_s2 + $0x60] sm:$0xff]  ;;  %v1708_v7 = vld [vmem:[%s2130_s2 + $0x30] sm:$0xff]  ;;  %v1713_v8 = vld [vmem:[%s2130_s2 + $0x38] sm:$0xff] }
  0x10   :  { %80 = vmatpush.msra.mxu0 %v48_v14  ;;  %181 = vmatpush.msra.mxu2 %v1668_v1  ;;  %v1694_v5 = vld [vmem:[%s2130_s2 + $0x40] sm:$0xff]  ;;  %v1727_v10 = vld [vmem:[%s2130_s2 + $0x28] sm:$0xff]  ;;  %v1736_v11 = vld [vmem:[%s2130_s2 + $0x10] sm:$0xff] }
  0x11   :  { %103 = vmatpush.msra.mxu1 %v64_v15  ;;  %201 = vmatpush.msra.mxu3 %v1675_v2  ;;  %v1722_v9 = vld [vmem:[%s2130_s2 + $0x20] sm:$0xff]  ;;  %v1741_v12 = vld [vmem:[%s2130_s2 + $0x18] sm:$0xff] }
  0x12   :  { %81 = vmatpush.msra.mxu0 %v47_v16  ;;  %182 = vmatpush.msra.mxu2 %v1680_v3  ;;  %v1757_v15 = vld [vmem:[%s2130_s2] sm:$0xff]  ;;  %v1762_v16 = vld [vmem:[%s2130_s2 + $0x8] sm:$0xff] }
  0x13   :  { %104 = vmatpush.msra.mxu1 %v63_v17  ;;  %202 = vmatpush.msra.mxu3 %v1685_v4 }
  0x14   :  { %82 = vmatpush.msra.mxu0 %v46_v18  ;;  %183 = vmatpush.msra.mxu2 %v1694_v5 }
  0x15   :  { %105 = vmatpush.msra.mxu1 %v62_v19  ;;  %203 = vmatpush.msra.mxu3 %v1699_v6  ;;  %v1822_v19 = vld [vmem:[%s2128_s1 + $0x101] ss:$0 sm:$0xff] }
  0x16   :  { %83 = vmatpush.msra.mxu0 %v45_v20  ;;  %184 = vmatpush.msra.mxu2 %v1708_v7 }
  0x17   :  { %106 = vmatpush.msra.mxu1 %v61_v21  ;;  %204 = vmatpush.msra.mxu3 %v1713_v8 }
  0x18   :  { %84 = vmatpush.msra.mxu0 %v44_v22  ;;  %185 = vmatpush.msra.mxu2 %v1722_v9 }
  0x19   :  { %107 = vmatpush.msra.mxu1 %v60_v23  ;;  %205 = vmatpush.msra.mxu3 %v1727_v10 }
  0x1a   :  { %85 = vmatpush.msra.mxu0 %v43_v24  ;;  %186 = vmatpush.msra.mxu2 %v1736_v11 }
  0x1b   :  { %108 = vmatpush.msra.mxu1 %v59_v25  ;;  %206 = vmatpush.msra.mxu3 %v1741_v12 }
  0x1c   :  { %86 = vmatpush.msra.mxu0 %v42_v26  ;;  %187 = vmatpush.msra.mxu2 %v1757_v15 }
  0x1d   :  { %109 = vmatpush.msra.mxu1 %v58_v27  ;;  %207 = vmatpush.msra.mxu3 %v1762_v16 }
  0x1e   :  { %87 = vmatpush.msra.mxu0 %v41_v28  ;;  %323 = vmatpush.msrb.mxu2 %v1658_v63 }
  0x1f   :  { %110 = vmatpush.msra.mxu1 %v57_v29  ;;  %343 = vmatpush.msrb.mxu3 %v1663_v0 }
  0x20   :  { %88 = vmatpush.msra.mxu0 %v40_v30  ;;  %324 = vmatpush.msrb.mxu2 %v1668_v1 }
  0x21   :  { %111 = vmatpush.msra.mxu1 %v56_v31  ;;  %89 = vmatmul.f32.vlgmr.msra.gmra.mxu0 %v36_v32 }
  0x22   :  { %112 = vmatmul.f32.vlgmr.msra.gmra.mxu1 %v37_v33  ;;  %465 = vmatpush.msrb.mxu0 %v1658_v63 }
  0x23   :  { %485 = vmatpush.msrb.mxu1 %v1663_v0  ;;  %344 = vmatpush.msrb.mxu3 %v1675_v2 }
  0x24   :  { %466 = vmatpush.msrb.mxu0 %v1668_v1  ;;  %325 = vmatpush.msrb.mxu2 %v1680_v3 }
  0x25   :  { %486 = vmatpush.msrb.mxu1 %v1675_v2  ;;  %345 = vmatpush.msrb.mxu3 %v1685_v4 }
  0x26   :  { %467 = vmatpush.msrb.mxu0 %v1680_v3  ;;  %326 = vmatpush.msrb.mxu2 %v1694_v5 }
  0x27   :  { %487 = vmatpush.msrb.mxu1 %v1685_v4  ;;  %346 = vmatpush.msrb.mxu3 %v1699_v6 }
  0x28   :  { %468 = vmatpush.msrb.mxu0 %v1694_v5  ;;  %327 = vmatpush.msrb.mxu2 %v1708_v7 }
  0x29   :  { %488 = vmatpush.msrb.mxu1 %v1699_v6  ;;  %347 = vmatpush.msrb.mxu3 %v1713_v8 }
  0x2a   :  { %469 = vmatpush.msrb.mxu0 %v1708_v7  ;;  %328 = vmatpush.msrb.mxu2 %v1722_v9 }
  0x2b   :  { %489 = vmatpush.msrb.mxu1 %v1713_v8  ;;  %348 = vmatpush.msrb.mxu3 %v1727_v10 }
  0x2c   :  { %470 = vmatpush.msrb.mxu0 %v1722_v9  ;;  %329 = vmatpush.msrb.mxu2 %v1736_v11 }
  0x2d   :  { %490 = vmatpush.msrb.mxu1 %v1727_v10  ;;  %349 = vmatpush.msrb.mxu3 %v1741_v12 }
  0x2e   :  { %471 = vmatpush.msrb.mxu0 %v1736_v11  ;;  %330 = vmatpush.msrb.mxu2 %v1757_v15 }
  0x2f   :  { %491 = vmatpush.msrb.mxu1 %v1741_v12  ;;  %350 = vmatpush.msrb.mxu3 %v1762_v16 }
  0x30   :  { %472 = vmatpush.msrb.mxu0 %v1757_v15 }
  0x31   :  { %492 = vmatpush.msrb.mxu1 %v1762_v16 }
  0x32   :  { %744 = vmatpush.msra.mxu0 %v1658_v63 }
  0x33   :  { %764 = vmatpush.msra.mxu1 %v1663_v0 }
  0x34   :  { %745 = vmatpush.msra.mxu0 %v1668_v1 }
  0x35   :  { %765 = vmatpush.msra.mxu1 %v1675_v2 }
  0x36   :  { %746 = vmatpush.msra.mxu0 %v1680_v3 }
  0x37   :  { %766 = vmatpush.msra.mxu1 %v1685_v4 }
  0x38   :  { %747 = vmatpush.msra.mxu0 %v1694_v5 }
  0x39   :  { %767 = vmatpush.msra.mxu1 %v1699_v6 }
  0x3a   :  { %748 = vmatpush.msra.mxu0 %v1708_v7 }
  0x3b   :  { %768 = vmatpush.msra.mxu1 %v1713_v8 }
  0x3c   :  { %749 = vmatpush.msra.mxu0 %v1722_v9 }
  0x3d   :  { %769 = vmatpush.msra.mxu1 %v1727_v10 }
  0x3e   :  { %750 = vmatpush.msra.mxu0 %v1736_v11 }
  0x3f   :  { %770 = vmatpush.msra.mxu1 %v1741_v12 }
  0x40   :  { %751 = vmatpush.msra.mxu0 %v1757_v15 }
  0x41   :  { %771 = vmatpush.msra.mxu1 %v1762_v16 }
  0x9e   :  { %v90_v35 = vpop.f32.mrf.mxu0 }
  0x9f   :  { %v113_v36 = vpop.f32.mrf.mxu1  ;;  %v91_v37 = vadd.f32 %v1636_v34, %v90_v35 }
  0xa1   :  { %v1639_v38 = vadd.f32 %v113_v36, %v91_v37 }
  0xa3   :  { %v1325_v39 = vmul.f32 -1.442695, %v1639_v38 }
  0xa5   :  { %1367 = vpow2.f32 %v1325_v39 }
  0xab   :  { %v1368_v40 = vpop.eup %1367 }
  0xac   :  { %v128_v41 = vadd.f32 1.0, %v1368_v40 }
  0xae   :  { %1369 = vrcp.f32 %v128_v41  ;;  %v140_v47 = vand.u32 2147483648, %v128_v41  ;;  %v138_v49 = vand.u32 2147483647, %v128_v41  ;;  %vm134_vm4 = vweird.f32 %v128_v41 }
  0xaf   :  { %1371 = vtanh.f32 %v1639_v38 }
  0xb0   :  { %v141_v52 = vor.u32 1.1754944e-38, %v140_v47  ;;  %vm139_vm6 = vcmp.eq.f32.partialorder %v138_v49, 8.507059e+37 }
  0xb4   :  { %v1370_v43 = vpop.eup %1369 }
  0xb5   :  { %v130_v45 = vmul.f32 %v1370_v43, %v128_v41  ;;  %vm135_vm2 = vweird.f32 %v1370_v43  ;;  %v1372_v54 = vpop.eup %1371 }
  0xb6   :  { %vm136_vm5 = vmor %vm134_vm4, %vm135_vm2 }
  0xb7   :  { %v131_v46 = vsub.f32 1.0, %v130_v45 }
  0xb9   :  { %v132_v48 = vmul.f32 %v1370_v43, %v131_v46 }
  0xbb   :  { %v133_v51 = vadd.f32 %v1370_v43, %v132_v48 }
  0xbd   :  { %v137_v53 = vsel %vm136_vm5, %v1370_v43, %v133_v51 }
  0xbe   :  { %v142_v55 = vsel %vm139_vm6, %v141_v52, %v137_v53 }
  0xbf   :  { %v144_v56 = vsel %vm1643_vm3, %v1372_v54, %v142_v55 }
  0xc0   :  { %147 = vrot.lane.b32.xlu0 %v144_v56, %s1504_s7  ;;  %v145_v59 = vmul.f32 0.0, %v144_v56 }
 0x132   :  { %v148_v57 = vpop.permute.xlu0 %147 }
 0x133   :  { %v150_v58 = vmul.f32 %v148_v57, %v144_v56 }
 0x135   :  { %152 = vrot.lane.b32.xlu0 %v150_v58, %s1505_s8 }
 0x1a7   :  { %v153_v60 = vpop.permute.xlu0 %152 }
 0x1a8   :  { %v1651_v61 = vadd.f32 %v153_v60, %v145_v59 }
 0x1aa   :  { %1373 = vtanh.f32 %v1651_v61 }
 0x1b0   :  { %v1374_v62 = vpop.eup %1373 }
 0x1b1   :  { %158 = vrot.lane.b32.xlu1 %v1374_v62, %s1504_s7 }
 0x223   :  { %v159_v13 = vpop.permute.xlu1 %158 }
 0x224   :  { %v161_v14 = vmul.f32 %v159_v13, %v144_v56 }
 0x226   :  { %163 = vrot.lane.b32.xlu1 %v161_v14, %s1505_s8 }
 0x298   :  { %v164_v17 = vpop.permute.xlu1 %163 }
 0x299   :  { %v167_v18 = vsel %vm166_vm7, %v164_v17, 0.0 }
 0x29a   :  { %1326 = vmatmul.msk.f32.vlgmr.msra.gmra.mxu2 %vm168_vm8, %v167_v18  ;;  %1327 = vmatmul.msk.f32.vlgmr.msra.gmra.mxu3 %vm168_vm8, %v167_v18  ;;  %v283_v18 = vrot.slane %v1651_v61, 6 }
 0x29b   :  { %607 = vmatpush.msra.mxu2 %v1658_v63  ;;  %627 = vmatpush.msra.mxu3 %v1663_v0 }
 0x29d   :  { %608 = vmatpush.msra.mxu2 %v1668_v1  ;;  %628 = vmatpush.msra.mxu3 %v1675_v2 }
 0x29f   :  { %609 = vmatpush.msra.mxu2 %v1680_v3  ;;  %629 = vmatpush.msra.mxu3 %v1685_v4 }
 0x2a1   :  { %610 = vmatpush.msra.mxu2 %v1694_v5  ;;  %630 = vmatpush.msra.mxu3 %v1699_v6 }
 0x2a3   :  { %611 = vmatpush.msra.mxu2 %v1708_v7  ;;  %631 = vmatpush.msra.mxu3 %v1713_v8 }
 0x2a5   :  { %612 = vmatpush.msra.mxu2 %v1722_v9  ;;  %632 = vmatpush.msra.mxu3 %v1727_v10 }
 0x2a7   :  { %613 = vmatpush.msra.mxu2 %v1736_v11  ;;  %633 = vmatpush.msra.mxu3 %v1741_v12 }
 0x2a9   :  { %614 = vmatpush.msra.mxu2 %v1757_v15  ;;  %634 = vmatpush.msra.mxu3 %v1762_v16 }
 0x31d   :  { %v189_v20 = vpop.f32.mrf.mxu2  ;;  %v209_v21 = vpop.f32.mrf.mxu3 }
 0x31e   :  { %v212_v22 = vadd.f32 %v1822_v19, %v189_v20  ;;  %v258_v23 = vrot.slane %v209_v21, 6 }
 0x320   :  { %v1328_v24 = vmul.f32 -1.442695, %v212_v22  ;;  %v260_v25 = vadd.f32 %v258_v23, %v1639_v38 }
 0x322   :  { %1375 = vpow2.f32 %v1328_v24  ;;  %v1329_v26 = vmul.f32 -1.442695, %v260_v25 }
 0x324   :  { %1377 = vpow2.f32 %v1329_v26 }
 0x328   :  { %v1376_v27 = vpop.eup %1375 }
 0x329   :  { %v217_v28 = vadd.f32 1.0, %v1376_v27 }
 0x32a   :  { %v1378_v29 = vpop.eup %1377 }
 0x32b   :  { %1379 = vrcp.f32 %v217_v28  ;;  %v265_v30 = vadd.f32 1.0, %v1378_v29  ;;  %v229_v37 = vand.u32 2147483648, %v217_v28  ;;  %v227_v40 = vand.u32 2147483647, %v217_v28 }
 0x32c   :  { %vm223_vm10 = vweird.f32 %v217_v28 }
 0x32d   :  { %1381 = vrcp.f32 %v265_v30  ;;  %v230_v44 = vor.u32 1.1754944e-38, %v229_v37  ;;  %vm228_vm12 = vcmp.eq.f32.partialorder %v227_v40, 8.507059e+37  ;;  %v277_v49 = vand.u32 2147483648, %v265_v30 }
 0x32e   :  { %1383 = vtanh.f32 %v212_v22  ;;  %vm271_vm14 = vweird.f32 %v265_v30  ;;  %v275_v52 = vand.u32 2147483647, %v265_v30 }
 0x32f   :  { %1385 = vtanh.f32 %v260_v25  ;;  %v278_v54 = vor.u32 1.1754944e-38, %v277_v49 }
 0x330   :  { %vm276_vm0 = vcmp.eq.f32.partialorder %v275_v52, 8.507059e+37 }
 0x331   :  { %v1380_v31 = vpop.eup %1379 }
 0x332   :  { %v219_v32 = vmul.f32 %v1380_v31, %v217_v28  ;;  %vm224_vm9 = vweird.f32 %v1380_v31 }
 0x333   :  { %v1382_v33 = vpop.eup %1381  ;;  %vm225_vm11 = vmor %vm223_vm10, %vm224_vm9 }
 0x334   :  { %v220_v35 = vsub.f32 1.0, %v219_v32  ;;  %v267_v36 = vmul.f32 %v1382_v33, %v265_v30  ;;  %vm272_vm13 = vweird.f32 %v1382_v33  ;;  %v1384_v47 = vpop.eup %1383 }
 0x335   :  { %vm273_vm15 = vmor %vm271_vm14, %vm272_vm13  ;;  %v1386_v56 = vpop.eup %1385 }
 0x336   :  { %v221_v39 = vmul.f32 %v1380_v31, %v220_v35  ;;  %v268_v41 = vsub.f32 1.0, %v267_v36 }
 0x338   :  { %v222_v42 = vadd.f32 %v1380_v31, %v221_v39  ;;  %v269_v43 = vmul.f32 %v1382_v33, %v268_v41 }
 0x33a   :  { %v226_v45 = vsel %vm225_vm11, %v1380_v31, %v222_v42  ;;  %v270_v46 = vadd.f32 %v1382_v33, %v269_v43 }
 0x33b   :  { %v231_v48 = vsel %vm228_vm12, %v230_v44, %v226_v45 }
 0x33c   :  { %v233_v51 = vsel %vm1643_vm3, %v1384_v47, %v231_v48  ;;  %v274_v53 = vsel %vm273_vm15, %v1382_v33, %v270_v46 }
 0x33d   :  { %236 = vrot.lane.b32.xlu2 %v233_v51, %s1504_s7  ;;  %v279_v55 = vsel %vm276_vm0, %v278_v54, %v274_v53  ;;  %v234_v13 = vmul.f32 0.0, %v233_v51 }
 0x33e   :  { %v281_v57 = vsel %vm1643_vm3, %v1386_v56, %v279_v55 }
 0x33f   :  { %v285_v20 = vmul.f32 %v283_v18, %v281_v57 }
 0x345   :  { %287 = vrot.lane.b32.xlu2 %v281_v57, %s1504_s7 }
 0x397   :  { %v237_v58 = vpop.permute.xlu2 %236 }
 0x398   :  { %v239_v59 = vmul.f32 %v237_v58, %v233_v51 }
 0x39a   :  { %241 = vrot.lane.b32.xlu0 %v239_v59, %s1505_s8 }
 0x39f   :  { %v288_v60 = vpop.permute.xlu2 %287 }
 0x3a0   :  { %v290_v62 = vmul.f32 %v288_v60, %v281_v57 }
 0x3a2   :  { %292 = vrot.lane.b32.xlu1 %v290_v62, %s1505_s8 }
 0x40c   :  { %v242_v14 = vpop.permute.xlu0 %241 }
 0x40d   :  { %v1834_v17 = vadd.f32 %v242_v14, %v234_v13 }
 0x40f   :  { %1387 = vtanh.f32 %v1834_v17 }
 0x414   :  { %v293_v21 = vpop.permute.xlu1 %292 }
 0x415   :  { %v1388_v22 = vpop.eup %1387  ;;  %v1838_v23 = vadd.f32 %v293_v21, %v285_v20 }
 0x416   :  { %247 = vrot.lane.b32.xlu2 %v1388_v22, %s1504_s7 }
 0x417   :  { %1389 = vtanh.f32 %v1838_v23 }
 0x41d   :  { %v1390_v24 = vpop.eup %1389 }
 0x41e   :  { %298 = vrot.lane.b32.xlu0 %v1390_v24, %s1504_s7 }
 0x470   :  { %v248_v25 = vpop.permute.xlu2 %247 }
 0x471   :  { %v1843_v26 = vmul.f32 %v248_v25, %v233_v51 }
 0x473   :  { %v306_v27 = vrot.slane %v1843_v26, 6 }
 0x475   :  { %307 = vrot.lane.b32.xlu2 %v306_v27, %s1504_s7 }
 0x490   :  { %v299_v61 = vpop.permute.xlu0 %298 }
 0x491   :  { %v301_v28 = vmul.f32 %v299_v61, %v281_v57 }
 0x493   :  { %303 = vrot.lane.b32.xlu1 %v301_v28, %s1505_s8 }
 0x4cf   :  { %v308_v29 = vpop.permute.xlu2 %307 }
 0x505   :  { %v304_v30 = vpop.permute.xlu1 %303 }
 0x506   :  { %v310_v31 = vsel %vm166_vm7, %v304_v30, %v308_v29 }
 0x507   :  { %v312_v32 = vrot.slane %v310_v31, 2 }
 0x509   :  { %1330 = vmatmul.msk.f32.vlgmr.msrb.gmra.mxu2 %vm168_vm8, %v312_v32  ;;  %1331 = vmatmul.msk.f32.vlgmr.msrb.gmra.mxu3 %vm168_vm8, %v312_v32 }
 0x50a   :  { %886 = vmatpush.msrb.mxu2 %v1658_v63  ;;  %906 = vmatpush.msrb.mxu3 %v1663_v0 }
 0x50c   :  { %887 = vmatpush.msrb.mxu2 %v1668_v1  ;;  %907 = vmatpush.msrb.mxu3 %v1675_v2 }
 0x50e   :  { %888 = vmatpush.msrb.mxu2 %v1680_v3  ;;  %908 = vmatpush.msrb.mxu3 %v1685_v4 }
 0x510   :  { %889 = vmatpush.msrb.mxu2 %v1694_v5  ;;  %909 = vmatpush.msrb.mxu3 %v1699_v6 }
 0x512   :  { %890 = vmatpush.msrb.mxu2 %v1708_v7  ;;  %910 = vmatpush.msrb.mxu3 %v1713_v8 }
 0x514   :  { %891 = vmatpush.msrb.mxu2 %v1722_v9  ;;  %911 = vmatpush.msrb.mxu3 %v1727_v10 }
 0x516   :  { %892 = vmatpush.msrb.mxu2 %v1736_v11  ;;  %912 = vmatpush.msrb.mxu3 %v1741_v12 }
 0x518   :  { %893 = vmatpush.msrb.mxu2 %v1757_v15  ;;  %913 = vmatpush.msrb.mxu3 %v1762_v16 }
 0x58c   :  { %v332_v33 = vpop.f32.mrf.mxu2  ;;  %v352_v35 = vpop.f32.mrf.mxu3 }
 0x58d   :  { %v355_v36 = vadd.f32 %v1822_v19, %v332_v33  ;;  %v400_v37 = vrot.slane %v352_v35, 4 }
 0x58f   :  { %v1332_v39 = vmul.f32 -1.442695, %v355_v36  ;;  %v402_v40 = vadd.f32 %v400_v37, %v1639_v38 }
 0x591   :  { %1391 = vpow2.f32 %v1332_v39  ;;  %v1333_v41 = vmul.f32 -1.442695, %v402_v40 }
 0x593   :  { %1393 = vpow2.f32 %v1333_v41 }
 0x597   :  { %v1392_v42 = vpop.eup %1391 }
 0x598   :  { %v360_v43 = vadd.f32 1.0, %v1392_v42  ;;  %v39_v42 = vld [vmem:[%s2129_s0 + $0x18] sm:$0xff] }
 0x599   :  { %v1394_v44 = vpop.eup %1393  ;;  %115 = vmatmul.f32.gmra.mxu1 %v39_v42 }
 0x59a   :  { %1395 = vrcp.f32 %v360_v43  ;;  %v407_v45 = vadd.f32 1.0, %v1394_v44  ;;  %v372_v52 = vand.u32 2147483648, %v360_v43  ;;  %v370_v54 = vand.u32 2147483647, %v360_v43 }
 0x59b   :  { %vm366_vm2 = vweird.f32 %v360_v43 }
 0x59c   :  { %1397 = vrcp.f32 %v407_v45  ;;  %v419_v56 = vand.u32 2147483648, %v407_v45  ;;  %v417_v59 = vand.u32 2147483647, %v407_v45  ;;  %v373_v60 = vor.u32 1.1754944e-38, %v372_v52 }
 0x59d   :  { %1399 = vtanh.f32 %v355_v36  ;;  %vm371_vm6 = vcmp.eq.f32.partialorder %v370_v54, 8.507059e+37  ;;  %vm413_vm9 = vweird.f32 %v407_v45  ;;  %v425_v36 = vrot.slane %v1838_v23, 6 }
 0x59e   :  { %1401 = vtanh.f32 %v402_v40  ;;  %v420_v20 = vor.u32 1.1754944e-38, %v419_v56  ;;  %vm418_vm11 = vcmp.eq.f32.partialorder %v417_v59, 8.507059e+37 }
 0x5a0   :  { %v1396_v46 = vpop.eup %1395 }
 0x5a1   :  { %v362_v47 = vmul.f32 %v1396_v46, %v360_v43  ;;  %vm367_vm1 = vweird.f32 %v1396_v46 }
 0x5a2   :  { %v1398_v48 = vpop.eup %1397  ;;  %vm368_vm5 = vmor %vm366_vm2, %vm367_vm1 }
 0x5a3   :  { %v363_v49 = vsub.f32 1.0, %v362_v47  ;;  %v409_v51 = vmul.f32 %v1398_v48, %v407_v45  ;;  %vm414_vm4 = vweird.f32 %v1398_v48  ;;  %v1400_v14 = vpop.eup %1399 }
 0x5a4   :  { %vm415_vm10 = vmor %vm413_vm9, %vm414_vm4  ;;  %v1402_v24 = vpop.eup %1401 }
 0x5a5   :  { %v364_v53 = vmul.f32 %v1396_v46, %v363_v49  ;;  %v410_v55 = vsub.f32 1.0, %v409_v51 }
 0x5a7   :  { %v365_v57 = vadd.f32 %v1396_v46, %v364_v53  ;;  %v411_v58 = vmul.f32 %v1398_v48, %v410_v55 }
 0x5a9   :  { %v369_v62 = vsel %vm368_vm5, %v1396_v46, %v365_v57  ;;  %v412_v13 = vadd.f32 %v1398_v48, %v411_v58 }
 0x5aa   :  { %v374_v18 = vsel %vm371_vm6, %v373_v60, %v369_v62 }
 0x5ab   :  { %v376_v21 = vsel %vm1643_vm3, %v1400_v14, %v374_v18  ;;  %v416_v22 = vsel %vm415_vm10, %v1398_v48, %v412_v13 }
 0x5ac   :  { %379 = vrot.lane.b32.xlu0 %v376_v21, %s1504_s7  ;;  %v421_v25 = vsel %vm418_vm11, %v420_v20, %v416_v22  ;;  %v377_v31 = vmul.f32 %v376_v21, %v1834_v17  ;;  %v38_v17 = vld [vmem:[%s2129_s0 + $0x10] sm:$0xff] }
 0x5ad   :  { %v423_v27 = vsel %vm1643_vm3, %v1402_v24, %v421_v25  ;;  %92 = vmatmul.f32.gmra.mxu0 %v38_v17 }
 0x5ae   :  { %429 = vrot.lane.b32.xlu1 %v423_v27, %s1504_s7  ;;  %v427_v37 = vmul.f32 %v425_v36, %v423_v27 }
 0x61e   :  { %v380_v61 = vpop.permute.xlu0 %379 }
 0x61f   :  { %v382_v28 = vmul.f32 %v380_v61, %v376_v21 }
 0x620   :  { %v430_v29 = vpop.permute.xlu1 %429 }
 0x621   :  { %v432_v30 = vmul.f32 %v430_v29, %v423_v27  ;;  %384 = vrot.lane.b32.xlu2 %v382_v28, %s1505_s8 }
 0x623   :  { %434 = vrot.lane.b32.xlu0 %v432_v30, %s1505_s8 }
 0x67b   :  { %v385_v32 = vpop.permute.xlu2 %384 }
 0x67c   :  { %v1878_v33 = vadd.f32 %v385_v32, %v377_v31 }
 0x67e   :  { %1403 = vtanh.f32 %v1878_v33 }
 0x684   :  { %v1404_v35 = vpop.eup %1403 }
 0x685   :  { %390 = vrot.lane.b32.xlu1 %v1404_v35, %s1504_s7 }
 0x695   :  { %v435_v39 = vpop.permute.xlu0 %434 }
 0x696   :  { %v1883_v40 = vadd.f32 %v435_v39, %v427_v37 }
 0x698   :  { %1405 = vtanh.f32 %v1883_v40 }
 0x69e   :  { %v1406_v41 = vpop.eup %1405 }
 0x69f   :  { %440 = vrot.lane.b32.xlu2 %v1406_v41, %s1504_s7 }
 0x6f7   :  { %v391_v23 = vpop.permute.xlu1 %390 }
 0x6f8   :  { %v1893_v43 = vmul.f32 %v391_v23, %v376_v21  ;;  %v567_v23 = vrot.slane %v1883_v40, 6 }
 0x6f9   :  { %v441_v44 = vpop.permute.xlu2 %440 }
 0x6fa   :  { %v448_v45 = vrot.slane %v1893_v43, 4  ;;  %v443_v46 = vmul.f32 %v441_v44, %v423_v27 }
 0x6fc   :  { %445 = vrot.lane.b32.xlu0 %v443_v46, %s1505_s8  ;;  %449 = vrot.lane.b32.xlu1 %v448_v45, %s1504_s7 }
 0x76e   :  { %v446_v47 = vpop.permute.xlu0 %445  ;;  %v450_v48 = vpop.permute.xlu1 %449 }
 0x76f   :  { %v452_v49 = vsel %vm166_vm7, %v446_v47, %v450_v48 }
 0x770   :  { %v454_v51 = vrot.slane %v452_v49, 4 }
 0x772   :  { %1334 = vmatmul.msk.f32.vlgmr.msrb.gmra.mxu0 %vm168_vm8, %v454_v51  ;;  %1335 = vmatmul.msk.f32.vlgmr.msrb.gmra.mxu1 %vm168_vm8, %v454_v51 }
 0x773   :  { %1028 = vmatpush.msrb.mxu0 %v1658_v63  ;;  %1048 = vmatpush.msrb.mxu1 %v1663_v0  ;;  %v1917_v0 = vpop.f32.mrf.mxu0 }
 0x775   :  { %1029 = vmatpush.msrb.mxu0 %v1668_v1  ;;  %1049 = vmatpush.msrb.mxu1 %v1675_v2  ;;  %v1919_v2 = vpop.f32.mrf.mxu1 }
 0x777   :  { %1030 = vmatpush.msrb.mxu0 %v1680_v3  ;;  %1050 = vmatpush.msrb.mxu1 %v1685_v4 }
 0x779   :  { %1031 = vmatpush.msrb.mxu0 %v1694_v5  ;;  %1051 = vmatpush.msrb.mxu1 %v1699_v6 }
 0x77b   :  { %1032 = vmatpush.msrb.mxu0 %v1708_v7  ;;  %1052 = vmatpush.msrb.mxu1 %v1713_v8 }
 0x77d   :  { %1033 = vmatpush.msrb.mxu0 %v1722_v9  ;;  %1053 = vmatpush.msrb.mxu1 %v1727_v10 }
 0x77f   :  { %1034 = vmatpush.msrb.mxu0 %v1736_v11  ;;  %1054 = vmatpush.msrb.mxu1 %v1741_v12 }
 0x781   :  { %1035 = vmatpush.msrb.mxu0 %v1757_v15  ;;  %1055 = vmatpush.msrb.mxu1 %v1762_v16 }
 0x7ef   :  { %v474_v4 = vpop.f32.mrf.mxu0  ;;  %v494_v6 = vpop.f32.mrf.mxu1 }
 0x7f0   :  { %v497_v8 = vadd.f32 %v1822_v19, %v474_v4  ;;  %v542_v52 = vrot.slane %v494_v6, 2 }
 0x7f2   :  { %v1336_v53 = vmul.f32 -1.442695, %v497_v8  ;;  %v544_v10 = vadd.f32 %v542_v52, %v1639_v38 }
 0x7f4   :  { %1407 = vpow2.f32 %v1336_v53  ;;  %v1337_v54 = vmul.f32 -1.442695, %v544_v10 }
 0x7f6   :  { %1409 = vpow2.f32 %v1337_v54 }
 0x7fa   :  { %v1408_v12 = vpop.eup %1407 }
 0x7fb   :  { %v502_v55 = vadd.f32 1.0, %v1408_v12 }
 0x7fc   :  { %v1410_v56 = vpop.eup %1409 }
 0x7fd   :  { %1411 = vrcp.f32 %v502_v55  ;;  %v549_v16 = vadd.f32 1.0, %v1410_v56  ;;  %v514_v13 = vand.u32 2147483648, %v502_v55  ;;  %v512_v18 = vand.u32 2147483647, %v502_v55 }
 0x7fe   :  { %vm508_vm13 = vweird.f32 %v502_v55 }
 0x7ff   :  { %1413 = vrcp.f32 %v549_v16  ;;  %v561_v20 = vand.u32 2147483648, %v549_v16  ;;  %v559_v24 = vand.u32 2147483647, %v549_v16  ;;  %v515_v25 = vor.u32 1.1754944e-38, %v514_v13 }
 0x800   :  { %1415 = vtanh.f32 %v497_v8  ;;  %vm513_vm0 = vcmp.eq.f32.partialorder %v512_v18, 8.507059e+37  ;;  %vm555_vm1 = vweird.f32 %v549_v16 }
 0x801   :  { %1417 = vtanh.f32 %v544_v10  ;;  %v562_v30 = vor.u32 1.1754944e-38, %v561_v20  ;;  %vm560_vm4 = vcmp.eq.f32.partialorder %v559_v24, 8.507059e+37 }
 0x803   :  { %v1412_v57 = vpop.eup %1411 }
 0x804   :  { %v504_v58 = vmul.f32 %v1412_v57, %v502_v55  ;;  %vm509_vm12 = vweird.f32 %v1412_v57  ;;  %v94_v55 = vadd.f32 %v1636_v34, %v1917_v0 }
 0x805   :  { %v1414_v59 = vpop.eup %1413  ;;  %vm510_vm15 = vmor %vm508_vm13, %vm509_vm12 }
 0x806   :  { %v505_v60 = vsub.f32 1.0, %v504_v58  ;;  %v551_v62 = vmul.f32 %v1414_v59, %v549_v16  ;;  %vm556_vm14 = vweird.f32 %v1414_v59  ;;  %v1416_v28 = vpop.eup %1415  ;;  %v1960_v56 = vadd.f32 %v1919_v2, %v94_v55 }
 0x807   :  { %vm557_vm2 = vmor %vm555_vm1, %vm556_vm14  ;;  %v1418_v35 = vpop.eup %1417 }
 0x808   :  { %v506_v14 = vmul.f32 %v1412_v57, %v505_v60  ;;  %v552_v38 = vsub.f32 1.0, %v551_v62 }
 0x80a   :  { %v507_v21 = vadd.f32 %v1412_v57, %v506_v14  ;;  %v553_v22 = vmul.f32 %v1414_v59, %v552_v38 }
 0x80c   :  { %v511_v27 = vsel %vm510_vm15, %v1412_v57, %v507_v21  ;;  %v554_v61 = vadd.f32 %v1414_v59, %v553_v22 }
 0x80d   :  { %v516_v29 = vsel %vm513_vm0, %v515_v25, %v511_v27 }
 0x80e   :  { %v518_v31 = vsel %vm1643_vm3, %v1416_v28, %v516_v29  ;;  %v558_v32 = vsel %vm557_vm2, %v1414_v59, %v554_v61 }
 0x80f   :  { %521 = vrot.lane.b32.xlu2 %v518_v31, %s1504_s7  ;;  %v563_v36 = vsel %vm560_vm4, %v562_v30, %v558_v32  ;;  %v519_v44 = vmul.f32 %v518_v31, %v1878_v33 }
 0x810   :  { %v565_v37 = vsel %vm1643_vm3, %v1418_v35, %v563_v36 }
 0x811   :  { %571 = vrot.lane.b32.xlu0 %v565_v37, %s1504_s7  ;;  %v569_v47 = vmul.f32 %v567_v23, %v565_v37 }
 0x869   :  { %v522_v39 = vpop.permute.xlu2 %521 }
 0x86a   :  { %v524_v41 = vmul.f32 %v522_v39, %v518_v31 }
 0x86c   :  { %526 = vrot.lane.b32.xlu1 %v524_v41, %s1505_s8 }
 0x883   :  { %v572_v17 = vpop.permute.xlu0 %571 }
 0x884   :  { %v574_v42 = vmul.f32 %v572_v17, %v565_v37 }
 0x886   :  { %576 = vrot.lane.b32.xlu2 %v574_v42, %s1505_s8 }
 0x8de   :  { %v527_v45 = vpop.permute.xlu1 %526 }
 0x8df   :  { %v1933_v46 = vadd.f32 %v527_v45, %v519_v44 }
 0x8e0   :  { %v577_v48 = vpop.permute.xlu2 %576 }
 0x8e1   :  { %1419 = vtanh.f32 %v1933_v46  ;;  %v1936_v49 = vadd.f32 %v577_v48, %v569_v47 }
 0x8e3   :  { %1421 = vtanh.f32 %v1936_v49  ;;  %v706_v17 = vrot.slane %v1936_v49, 6 }
 0x8e7   :  { %v1420_v51 = vpop.eup %1419 }
 0x8e8   :  { %532 = vrot.lane.b32.xlu0 %v1420_v51, %s1504_s7 }
 0x8e9   :  { %v1422_v4 = vpop.eup %1421 }
 0x8ea   :  { %582 = vrot.lane.b32.xlu1 %v1422_v4, %s1504_s7 }
 0x95a   :  { %v533_v40 = vpop.permute.xlu0 %532 }
 0x95b   :  { %v1941_v6 = vmul.f32 %v533_v40, %v518_v31 }
 0x95c   :  { %v583_v33 = vpop.permute.xlu1 %582 }
 0x95d   :  { %v590_v8 = vrot.slane %v1941_v6, 2  ;;  %v585_v52 = vmul.f32 %v583_v33, %v565_v37 }
 0x95f   :  { %587 = vrot.lane.b32.xlu2 %v585_v52, %s1505_s8  ;;  %591 = vrot.lane.b32.xlu0 %v590_v8, %s1504_s7 }
 0x9b9   :  { %v588_v53 = vpop.permute.xlu2 %587 }
 0x9d1   :  { %v592_v10 = vpop.permute.xlu0 %591 }
 0x9d2   :  { %v594_v54 = vsel %vm166_vm7, %v588_v53, %v592_v10 }
 0x9d3   :  { %v596_v12 = vrot.slane %v594_v54, 6 }
 0x9d5   :  { %1338 = vmatmul.msk.f32.vlgmr.msra.gmra.mxu2 %vm168_vm8, %v596_v12  ;;  %1339 = vmatmul.msk.f32.vlgmr.msra.gmra.mxu3 %vm168_vm8, %v596_v12 }
 0x9d6   :  { %1170 = vmatpush.msra.mxu2 %v1658_v63 }
 0x9d8   :  { %1171 = vmatpush.msra.mxu2 %v1668_v1 }
 0x9da   :  { %1172 = vmatpush.msra.mxu2 %v1680_v3 }
 0x9dc   :  { %1173 = vmatpush.msra.mxu2 %v1694_v5 }
 0x9de   :  { %1174 = vmatpush.msra.mxu2 %v1708_v7 }
 0x9e0   :  { %1175 = vmatpush.msra.mxu2 %v1722_v9 }
 0x9e2   :  { %1176 = vmatpush.msra.mxu2 %v1736_v11 }
 0x9e4   :  { %1177 = vmatpush.msra.mxu2 %v1757_v15 }
 0xa58   :  { %v616_v63 = vpop.f32.mrf.mxu2  ;;  %v636_v1 = vpop.f32.mrf.mxu3 }
 0xa59   :  { %v639_v3 = vadd.f32 %v1822_v19, %v616_v63  ;;  %v683_v5 = vadd.f32 %v636_v1, %v1960_v56 }
 0xa5b   :  { %v1340_v16 = vmul.f32 -1.442695, %v639_v3  ;;  %v1341_v7 = vmul.f32 -1.442695, %v683_v5 }
 0xa5d   :  { %1423 = vpow2.f32 %v1340_v16 }
 0xa5e   :  { %1425 = vpow2.f32 %v1341_v7 }
 0xa63   :  { %v1424_v9 = vpop.eup %1423 }
 0xa64   :  { %v1426_v11 = vpop.eup %1425  ;;  %v644_v57 = vadd.f32 1.0, %v1424_v9 }
 0xa65   :  { %v688_v15 = vadd.f32 1.0, %v1426_v11 }
 0xa66   :  { %1427 = vrcp.f32 %v644_v57  ;;  %v656_v62 = vand.u32 2147483648, %v644_v57  ;;  %v654_v18 = vand.u32 2147483647, %v644_v57  ;;  %vm650_vm9 = vweird.f32 %v644_v57 }
 0xa67   :  { %1429 = vrcp.f32 %v688_v15  ;;  %v700_v13 = vand.u32 2147483648, %v688_v15  ;;  %v698_v20 = vand.u32 2147483647, %v688_v15  ;;  %vm694_vm10 = vweird.f32 %v688_v15 }
 0xa68   :  { %1431 = vtanh.f32 %v639_v3  ;;  %v657_v24 = vor.u32 1.1754944e-38, %v656_v62  ;;  %vm655_vm13 = vcmp.eq.f32.partialorder %v654_v18, 8.507059e+37 }
 0xa69   :  { %1433 = vtanh.f32 %v683_v5  ;;  %v701_v27 = vor.u32 1.1754944e-38, %v700_v13  ;;  %vm699_vm14 = vcmp.eq.f32.partialorder %v698_v20, 8.507059e+37 }
 0xa6c   :  { %v1428_v34 = vpop.eup %1427 }
 0xa6d   :  { %v1430_v0 = vpop.eup %1429  ;;  %v646_v2 = vmul.f32 %v1428_v34, %v644_v57  ;;  %vm651_vm5 = vweird.f32 %v1428_v34 }
 0xa6e   :  { %v690_v58 = vmul.f32 %v1430_v0, %v688_v15  ;;  %vm695_vm6 = vweird.f32 %v1430_v0  ;;  %vm652_vm11 = vmor %vm650_vm9, %vm651_vm5  ;;  %v1432_v25 = vpop.eup %1431 }
 0xa6f   :  { %v647_v59 = vsub.f32 1.0, %v646_v2  ;;  %vm696_vm12 = vmor %vm694_vm10, %vm695_vm6  ;;  %v1434_v28 = vpop.eup %1433 }
 0xa70   :  { %v691_v60 = vsub.f32 1.0, %v690_v58 }
 0xa71   :  { %v648_v14 = vmul.f32 %v1428_v34, %v647_v59 }
 0xa72   :  { %v692_v38 = vmul.f32 %v1430_v0, %v691_v60 }
 0xa73   :  { %v649_v21 = vadd.f32 %v1428_v34, %v648_v14 }
 0xa74   :  { %v693_v22 = vadd.f32 %v1430_v0, %v692_v38 }
 0xa75   :  { %v653_v61 = vsel %vm652_vm11, %v1428_v34, %v649_v21 }
 0xa76   :  { %v697_v29 = vsel %vm696_vm12, %v1430_v0, %v693_v22  ;;  %v658_v30 = vsel %vm655_vm13, %v657_v24, %v653_v61 }
 0xa77   :  { %v702_v31 = vsel %vm699_vm14, %v701_v27, %v697_v29  ;;  %v660_v32 = vsel %vm1643_vm3, %v1432_v25, %v658_v30 }
 0xa78   :  { %v704_v35 = vsel %vm1643_vm3, %v1434_v28, %v702_v31  ;;  %663 = vrot.lane.b32.xlu1 %v660_v32, %s1504_s7  ;;  %v661_v47 = vmul.f32 %v660_v32, %v1933_v46 }
 0xa79   :  { %710 = vrot.lane.b32.xlu2 %v704_v35, %s1504_s7  ;;  %v708_v42 = vmul.f32 %v706_v17, %v704_v35 }
 0xad3   :  { %v711_v36 = vpop.permute.xlu2 %710 }
 0xad4   :  { %v713_v37 = vmul.f32 %v711_v36, %v704_v35 }
 0xad6   :  { %715 = vrot.lane.b32.xlu1 %v713_v37, %s1505_s8 }
 0xaea   :  { %v664_v39 = vpop.permute.xlu1 %663 }
 0xaeb   :  { %v666_v41 = vmul.f32 %v664_v39, %v660_v32 }
 0xaed   :  { %668 = vrot.lane.b32.xlu0 %v666_v41, %s1505_s8 }
 0xb48   :  { %v716_v23 = vpop.permute.xlu1 %715 }
 0xb49   :  { %v1973_v44 = vadd.f32 %v716_v23, %v708_v42 }
 0xb4b   :  { %1435 = vtanh.f32 %v1973_v44  ;;  %v846_v42 = vrot.slane %v1973_v44, 6 }
 0xb51   :  { %v1436_v45 = vpop.eup %1435 }
 0xb52   :  { %721 = vrot.lane.b32.xlu0 %v1436_v45, %s1504_s7 }
 0xb5f   :  { %v669_v48 = vpop.permute.xlu0 %668 }
 0xb60   :  { %v1978_v51 = vadd.f32 %v669_v48, %v661_v47 }
 0xb62   :  { %1437 = vtanh.f32 %v1978_v51 }
 0xb68   :  { %v1438_v4 = vpop.eup %1437 }
 0xb69   :  { %674 = vrot.lane.b32.xlu2 %v1438_v4, %s1504_s7 }
 0xbc3   :  { %v675_v49 = vpop.permute.xlu2 %674 }
 0xbc4   :  { %v722_v40 = vpop.permute.xlu0 %721  ;;  %v1982_v33 = vmul.f32 %v675_v49, %v660_v32 }
 0xbc5   :  { %v724_v8 = vmul.f32 %v722_v40, %v704_v35 }
 0xbc6   :  { %729 = vrot.lane.b32.xlu2 %v1982_v33, %s1504_s7 }
 0xbc7   :  { %726 = vrot.lane.b32.xlu1 %v724_v8, %s1505_s8 }
 0xc20   :  { %v730_v52 = vpop.permute.xlu2 %729 }
 0xc39   :  { %v727_v46 = vpop.permute.xlu1 %726 }
 0xc3a   :  { %v732_v53 = vsel %vm166_vm7, %v727_v46, %v730_v52 }
 0xc3b   :  { %1342 = vmatmul.msk.f32.vlgmr.msra.gmra.mxu0 %vm168_vm8, %v732_v53  ;;  %1343 = vmatmul.msk.f32.vlgmr.msra.gmra.mxu1 %vm168_vm8, %v732_v53 }
 0xcb8   :  { %v753_v10 = vpop.f32.mrf.mxu0  ;;  %v773_v54 = vpop.f32.mrf.mxu1 }
 0xcb9   :  { %v776_v12 = vadd.f32 %v1822_v19, %v753_v10  ;;  %v821_v55 = vrot.slane %v773_v54, 6 }
 0xcbb   :  { %v1344_v63 = vmul.f32 -1.442695, %v776_v12  ;;  %v823_v1 = vadd.f32 %v821_v55, %v1960_v56 }
 0xcbd   :  { %1439 = vpow2.f32 %v1344_v63  ;;  %v1345_v3 = vmul.f32 -1.442695, %v823_v1 }
 0xcbf   :  { %1441 = vpow2.f32 %v1345_v3 }
 0xcc3   :  { %v1440_v5 = vpop.eup %1439 }
 0xcc4   :  { %v781_v16 = vadd.f32 1.0, %v1440_v5 }
 0xcc5   :  { %v1442_v7 = vpop.eup %1441 }
 0xcc6   :  { %1443 = vrcp.f32 %v781_v16  ;;  %v828_v9 = vadd.f32 1.0, %v1442_v7  ;;  %v793_v2 = vand.u32 2147483648, %v781_v16  ;;  %v791_v59 = vand.u32 2147483647, %v781_v16 }
 0xcc7   :  { %vm787_vm0 = vweird.f32 %v781_v16 }
 0xcc8   :  { %1445 = vrcp.f32 %v828_v9  ;;  %v840_v62 = vand.u32 2147483648, %v828_v9  ;;  %v838_v18 = vand.u32 2147483647, %v828_v9  ;;  %v794_v38 = vor.u32 1.1754944e-38, %v793_v2 }
 0xcc9   :  { %1447 = vtanh.f32 %v776_v12  ;;  %vm792_vm4 = vcmp.eq.f32.partialorder %v791_v59, 8.507059e+37  ;;  %vm834_vm5 = vweird.f32 %v828_v9 }
 0xcca   :  { %1449 = vtanh.f32 %v823_v1  ;;  %v841_v25 = vor.u32 1.1754944e-38, %v840_v62  ;;  %vm839_vm9 = vcmp.eq.f32.partialorder %v838_v18, 8.507059e+37 }
 0xccc   :  { %v1444_v11 = vpop.eup %1443 }
 0xccd   :  { %v783_v57 = vmul.f32 %v1444_v11, %v781_v16  ;;  %vm788_vm15 = vweird.f32 %v1444_v11 }
 0xcce   :  { %v1446_v15 = vpop.eup %1445  ;;  %vm789_vm2 = vmor %vm787_vm0, %vm788_vm15 }
 0xccf   :  { %v784_v34 = vsub.f32 1.0, %v783_v57  ;;  %v830_v0 = vmul.f32 %v1446_v15, %v828_v9  ;;  %vm835_vm1 = vweird.f32 %v1446_v15  ;;  %v1448_v22 = vpop.eup %1447 }
 0xcd0   :  { %vm836_vm6 = vmor %vm834_vm5, %vm835_vm1  ;;  %v1450_v28 = vpop.eup %1449 }
 0xcd1   :  { %v785_v58 = vmul.f32 %v1444_v11, %v784_v34  ;;  %v831_v60 = vsub.f32 1.0, %v830_v0 }
 0xcd3   :  { %v786_v13 = vadd.f32 %v1444_v11, %v785_v58  ;;  %v832_v14 = vmul.f32 %v1446_v15, %v831_v60 }
 0xcd5   :  { %v790_v20 = vsel %vm789_vm2, %v1444_v11, %v786_v13  ;;  %v833_v21 = vadd.f32 %v1446_v15, %v832_v14 }
 0xcd6   :  { %v795_v24 = vsel %vm792_vm4, %v794_v38, %v790_v20 }
 0xcd7   :  { %v797_v27 = vsel %vm1643_vm3, %v1448_v22, %v795_v24  ;;  %v837_v61 = vsel %vm836_vm6, %v1446_v15, %v833_v21 }
 0xcd8   :  { %800 = vrot.lane.b32.xlu0 %v797_v27, %s1504_s7  ;;  %v842_v29 = vsel %vm839_vm9, %v841_v25, %v837_v61  ;;  %v798_v37 = vmul.f32 %v797_v27, %v1978_v51 }
 0xcd9   :  { %v844_v30 = vsel %vm1643_vm3, %v1450_v28, %v842_v29 }
 0xcda   :  { %850 = vrot.lane.b32.xlu1 %v844_v30, %s1504_s7  ;;  %v848_v23 = vmul.f32 %v846_v42, %v844_v30 }
 0xd4a   :  { %v801_v31 = vpop.permute.xlu0 %800 }
 0xd4b   :  { %v803_v32 = vmul.f32 %v801_v31, %v797_v27 }
 0xd4c   :  { %v851_v35 = vpop.permute.xlu1 %850 }
 0xd4d   :  { %v853_v36 = vmul.f32 %v851_v35, %v844_v30  ;;  %805 = vrot.lane.b32.xlu2 %v803_v32, %s1505_s8 }
 0xd4f   :  { %855 = vrot.lane.b32.xlu0 %v853_v36, %s1505_s8 }
 0xda7   :  { %v806_v39 = vpop.permute.xlu2 %805 }
 0xda8   :  { %v2001_v41 = vadd.f32 %v806_v39, %v798_v37 }
 0xdaa   :  { %1451 = vtanh.f32 %v2001_v41 }
 0xdb0   :  { %v1452_v17 = vpop.eup %1451 }
 0xdb1   :  { %811 = vrot.lane.b32.xlu1 %v1452_v17, %s1504_s7 }
 0xdc1   :  { %v856_v45 = vpop.permute.xlu0 %855 }
 0xdc2   :  { %v2006_v47 = vadd.f32 %v856_v45, %v848_v23 }
 0xdc4   :  { %1453 = vtanh.f32 %v2006_v47  ;;  %v988_v36 = vrot.slane %v2006_v47, 6 }
 0xdca   :  { %v1454_v48 = vpop.eup %1453 }
 0xdcb   :  { %861 = vrot.lane.b32.xlu2 %v1454_v48, %s1504_s7 }
 0xe23   :  { %v812_v51 = vpop.permute.xlu1 %811 }
 0xe24   :  { %v2010_v4 = vmul.f32 %v812_v51, %v797_v27 }
 0xe25   :  { %v862_v49 = vpop.permute.xlu2 %861 }
 0xe26   :  { %v869_v40 = vrot.slane %v2010_v4, 6  ;;  %v864_v8 = vmul.f32 %v862_v49, %v844_v30 }
 0xe28   :  { %866 = vrot.lane.b32.xlu0 %v864_v8, %s1505_s8  ;;  %870 = vrot.lane.b32.xlu1 %v869_v40, %s1504_s7 }
 0xe9a   :  { %v867_v44 = vpop.permute.xlu0 %866  ;;  %v871_v52 = vpop.permute.xlu1 %870 }
 0xe9b   :  { %v873_v46 = vsel %vm166_vm7, %v867_v44, %v871_v52 }
 0xe9c   :  { %v875_v53 = vrot.slane %v873_v46, 2 }
 0xe9e   :  { %1346 = vmatmul.msk.f32.vlgmr.msrb.gmra.mxu2 %vm168_vm8, %v875_v53  ;;  %1347 = vmatmul.msk.f32.vlgmr.msrb.gmra.mxu3 %vm168_vm8, %v875_v53 }
 0xf21   :  { %v895_v10 = vpop.f32.mrf.mxu2  ;;  %v915_v54 = vpop.f32.mrf.mxu3 }
 0xf22   :  { %v918_v12 = vadd.f32 %v1822_v19, %v895_v10  ;;  %v963_v55 = vrot.slane %v915_v54, 4 }
 0xf24   :  { %v1348_v63 = vmul.f32 -1.442695, %v918_v12  ;;  %v965_v1 = vadd.f32 %v963_v55, %v1960_v56 }
 0xf26   :  { %1455 = vpow2.f32 %v1348_v63  ;;  %v1349_v3 = vmul.f32 -1.442695, %v965_v1 }
 0xf28   :  { %1457 = vpow2.f32 %v1349_v3 }
 0xf2c   :  { %v1456_v5 = vpop.eup %1455 }
 0xf2d   :  { %v923_v16 = vadd.f32 1.0, %v1456_v5 }
 0xf2e   :  { %v1458_v7 = vpop.eup %1457 }
 0xf2f   :  { %1459 = vrcp.f32 %v923_v16  ;;  %v970_v9 = vadd.f32 1.0, %v1458_v7  ;;  %v935_v19 = vand.u32 2147483648, %v923_v16  ;;  %v933_v58 = vand.u32 2147483647, %v923_v16 }
 0xf30   :  { %vm929_vm11 = vweird.f32 %v923_v16 }
 0xf31   :  { %1461 = vrcp.f32 %v970_v9  ;;  %v982_v60 = vand.u32 2147483648, %v970_v9  ;;  %v980_v14 = vand.u32 2147483647, %v970_v9  ;;  %v936_v18 = vor.u32 1.1754944e-38, %v935_v19 }
 0xf32   :  { %1463 = vtanh.f32 %v918_v12  ;;  %vm934_vm14 = vcmp.eq.f32.partialorder %v933_v58, 8.507059e+37  ;;  %vm976_vm15 = vweird.f32 %v970_v9  ;;  %v2049_v12 = vld [vmem:[%s2128_s1 + $0x101] ss:$0 sm:$0xff] }
 0xf33   :  { %1465 = vtanh.f32 %v965_v1  ;;  %v983_v24 = vor.u32 1.1754944e-38, %v982_v60  ;;  %vm981_vm1 = vcmp.eq.f32.partialorder %v980_v14, 8.507059e+37 }
 0xf35   :  { %v1460_v11 = vpop.eup %1459 }
 0xf36   :  { %v925_v57 = vmul.f32 %v1460_v11, %v923_v16  ;;  %vm930_vm10 = vweird.f32 %v1460_v11 }
 0xf37   :  { %v1462_v15 = vpop.eup %1461  ;;  %vm931_vm13 = vmor %vm929_vm11, %vm930_vm10 }
 0xf38   :  { %v926_v34 = vsub.f32 1.0, %v925_v57  ;;  %v972_v0 = vmul.f32 %v1462_v15, %v970_v9  ;;  %vm977_vm12 = vweird.f32 %v1462_v15  ;;  %v1464_v21 = vpop.eup %1463 }
 0xf39   :  { %vm978_vm0 = vmor %vm976_vm15, %vm977_vm12  ;;  %v1466_v61 = vpop.eup %1465 }
 0xf3a   :  { %v927_v2 = vmul.f32 %v1460_v11, %v926_v34  ;;  %v973_v59 = vsub.f32 1.0, %v972_v0 }
 0xf3c   :  { %v928_v62 = vadd.f32 %v1460_v11, %v927_v2  ;;  %v974_v13 = vmul.f32 %v1462_v15, %v973_v59 }
 0xf3e   :  { %v932_v38 = vsel %vm931_vm13, %v1460_v11, %v928_v62  ;;  %v975_v20 = vadd.f32 %v1462_v15, %v974_v13 }
 0xf3f   :  { %v937_v22 = vsel %vm934_vm14, %v936_v18, %v932_v38 }
 0xf40   :  { %v939_v25 = vsel %vm1643_vm3, %v1464_v21, %v937_v22  ;;  %v979_v27 = vsel %vm978_vm0, %v1462_v15, %v975_v20  ;;  %vm255_vm0 = vcmask 254976  }
 0xf41   :  { %942 = vrot.lane.b32.xlu2 %v939_v25, %s1504_s7  ;;  %v984_v28 = vsel %vm981_vm1, %v983_v24, %v979_v27  ;;  %v940_v37 = vmul.f32 %v939_v25, %v2001_v41 }
 0xf42   :  { %v986_v29 = vsel %vm1643_vm3, %v1466_v61, %v984_v28 }
 0xf43   :  { %992 = vrot.lane.b32.xlu0 %v986_v29, %s1504_s7  ;;  %v990_v42 = vmul.f32 %v988_v36, %v986_v29 }
 0xf9b   :  { %v943_v30 = vpop.permute.xlu2 %942 }
 0xf9c   :  { %v945_v31 = vmul.f32 %v943_v30, %v939_v25 }
 0xf9e   :  { %947 = vrot.lane.b32.xlu1 %v945_v31, %s1505_s8 }
 0xfb5   :  { %v993_v32 = vpop.permute.xlu0 %992 }
 0xfb6   :  { %v995_v35 = vmul.f32 %v993_v32, %v986_v29 }
 0xfb8   :  { %997 = vrot.lane.b32.xlu2 %v995_v35, %s1505_s8 }
0x1010   :  { %v948_v39 = vpop.permute.xlu1 %947 }
0x1011   :  { %v2030_v17 = vadd.f32 %v948_v39, %v940_v37 }
0x1012   :  { %v998_v23 = vpop.permute.xlu2 %997 }
0x1013   :  { %1467 = vtanh.f32 %v2030_v17  ;;  %v2033_v45 = vadd.f32 %v998_v23, %v990_v42 }
0x1015   :  { %1469 = vtanh.f32 %v2033_v45  ;;  %v1130_v36 = vrot.slane %v2033_v45, 6 }
0x1019   :  { %v1468_v48 = vpop.eup %1467 }
0x101a   :  { %953 = vrot.lane.b32.xlu0 %v1468_v48, %s1504_s7 }
0x101b   :  { %v1470_v51 = vpop.eup %1469 }
0x101c   :  { %1003 = vrot.lane.b32.xlu1 %v1470_v51, %s1504_s7 }
0x108c   :  { %v954_v47 = vpop.permute.xlu0 %953 }
0x108d   :  { %v2038_v49 = vmul.f32 %v954_v47, %v939_v25 }
0x108e   :  { %v1004_v41 = vpop.permute.xlu1 %1003 }
0x108f   :  { %v1011_v40 = vrot.slane %v2038_v49, 4  ;;  %v1006_v8 = vmul.f32 %v1004_v41, %v986_v29 }
0x1091   :  { %1008 = vrot.lane.b32.xlu2 %v1006_v8, %s1505_s8  ;;  %1012 = vrot.lane.b32.xlu0 %v1011_v40, %s1504_s7 }
0x10eb   :  { %v1009_v44 = vpop.permute.xlu2 %1008 }
0x1103   :  { %v1013_v52 = vpop.permute.xlu0 %1012 }
0x1104   :  { %v1015_v46 = vsel %vm166_vm7, %v1009_v44, %v1013_v52 }
0x1105   :  { %v1017_v53 = vrot.slane %v1015_v46, 4 }
0x1107   :  { %1350 = vmatmul.msk.f32.vlgmr.msrb.gmra.mxu0 %vm168_vm8, %v1017_v53  ;;  %1351 = vmatmul.msk.f32.vlgmr.msrb.gmra.mxu1 %vm168_vm8, %v1017_v53 }
0x1184   :  { %v1037_v10 = vpop.f32.mrf.mxu0  ;;  %v1057_v54 = vpop.f32.mrf.mxu1 }
0x1185   :  { %v1060_v55 = vadd.f32 %v2049_v12, %v1037_v10  ;;  %v1105_v63 = vrot.slane %v1057_v54, 2 }
0x1187   :  { %v1352_v1 = vmul.f32 -1.442695, %v1060_v55  ;;  %v1107_v3 = vadd.f32 %v1105_v63, %v1960_v56 }
0x1189   :  { %1471 = vpow2.f32 %v1352_v1  ;;  %v1353_v5 = vmul.f32 -1.442695, %v1107_v3 }
0x118b   :  { %1473 = vpow2.f32 %v1353_v5 }
0x118f   :  { %v1472_v16 = vpop.eup %1471 }
0x1190   :  { %v1065_v7 = vadd.f32 1.0, %v1472_v16 }
0x1191   :  { %v1474_v9 = vpop.eup %1473 }
0x1192   :  { %1475 = vrcp.f32 %v1065_v7  ;;  %v1112_v11 = vadd.f32 1.0, %v1474_v9  ;;  %v1077_v2 = vand.u32 2147483648, %v1065_v7  ;;  %v1075_v59 = vand.u32 2147483647, %v1065_v7 }
0x1193   :  { %vm1071_vm4 = vweird.f32 %v1065_v7 }
0x1194   :  { %1477 = vrcp.f32 %v1112_v11  ;;  %v1124_v60 = vand.u32 2147483648, %v1112_v11  ;;  %v1122_v14 = vand.u32 2147483647, %v1112_v11  ;;  %v1078_v18 = vor.u32 1.1754944e-38, %v1077_v2 }
0x1195   :  { %1479 = vtanh.f32 %v1060_v55  ;;  %vm1076_vm9 = vcmp.eq.f32.partialorder %v1075_v59, 8.507059e+37  ;;  %vm1118_vm10 = vweird.f32 %v1112_v11 }
0x1196   :  { %1481 = vtanh.f32 %v1107_v3  ;;  %v1125_v24 = vor.u32 1.1754944e-38, %v1124_v60  ;;  %vm1123_vm12 = vcmp.eq.f32.partialorder %v1122_v14, 8.507059e+37 }
0x1198   :  { %v1476_v57 = vpop.eup %1475 }
0x1199   :  { %v1067_v15 = vmul.f32 %v1476_v57, %v1065_v7  ;;  %vm1072_vm2 = vweird.f32 %v1476_v57 }
0x119a   :  { %v1478_v34 = vpop.eup %1477  ;;  %vm1073_vm6 = vmor %vm1071_vm4, %vm1072_vm2  ;;  %vm1318_vm2 = vcmask 7168  }
0x119b   :  { %v1068_v0 = vsub.f32 1.0, %v1067_v15  ;;  %v1114_v19 = vmul.f32 %v1478_v34, %v1112_v11  ;;  %vm1119_vm5 = vweird.f32 %v1478_v34  ;;  %v1480_v21 = vpop.eup %1479 }
0x119c   :  { %vm1120_vm11 = vmor %vm1118_vm10, %vm1119_vm5  ;;  %v1482_v61 = vpop.eup %1481 }
0x119d   :  { %v1069_v58 = vmul.f32 %v1476_v57, %v1068_v0  ;;  %v1115_v56 = vsub.f32 1.0, %v1114_v19 }
0x119f   :  { %v1070_v62 = vadd.f32 %v1476_v57, %v1069_v58  ;;  %v1116_v13 = vmul.f32 %v1478_v34, %v1115_v56 }
0x11a1   :  { %v1074_v38 = vsel %vm1073_vm6, %v1476_v57, %v1070_v62  ;;  %v1117_v20 = vadd.f32 %v1478_v34, %v1116_v13 }
0x11a2   :  { %v1079_v22 = vsel %vm1076_vm9, %v1078_v18, %v1074_v38  ;;  %v1230_v18 = vld [vmem:[%s2131_s3 + $0x10] sm:$0xff]  ;;  %v1229_v38 = vld [vmem:[%s2131_s3 + $0x8] sm:$0xff] }
0x11a3   :  { %v1081_v25 = vsel %vm1643_vm3, %v1480_v21, %v1079_v22  ;;  %v1121_v27 = vsel %vm1120_vm11, %v1478_v34, %v1117_v20 }
0x11a4   :  { %1084 = vrot.lane.b32.xlu1 %v1081_v25, %s1504_s7  ;;  %v1126_v28 = vsel %vm1123_vm12, %v1125_v24, %v1121_v27  ;;  %v1082_v48 = vmul.f32 %v1081_v25, %v2030_v17 }
0x11a5   :  { %v1128_v29 = vsel %vm1643_vm3, %v1482_v61, %v1126_v28  ;;  %v1364_v61 = vld [vmem:[%s2131_s3 + $0x20] ss:$0 sm:$0xff] }
0x11a6   :  { %1134 = vrot.lane.b32.xlu2 %v1128_v29, %s1504_s7  ;;  %v1132_v37 = vmul.f32 %v1130_v36, %v1128_v29 }
0x1200   :  { %v1135_v30 = vpop.permute.xlu2 %1134 }
0x1201   :  { %v1137_v31 = vmul.f32 %v1135_v30, %v1128_v29  ;;  %v1365_v30 = vld [vmem:[%s2131_s3 + $0x21] ss:$0 sm:$0xff] }
0x1203   :  { %1139 = vrot.lane.b32.xlu1 %v1137_v31, %s1505_s8 }
0x1216   :  { %v1085_v32 = vpop.permute.xlu1 %1084 }
0x1217   :  { %v1087_v35 = vmul.f32 %v1085_v32, %v1081_v25 }
0x1219   :  { %1089 = vrot.lane.b32.xlu0 %v1087_v35, %s1505_s8 }
0x1275   :  { %v1140_v39 = vpop.permute.xlu1 %1139 }
0x1276   :  { %v1142_v42 = vadd.f32 %v1140_v39, %v1132_v37 }
0x1278   :  { %1483 = vtanh.f32 %v1142_v42 }
0x127e   :  { %v1484_v23 = vpop.eup %1483 }
0x127f   :  { %1145 = vrot.lane.b32.xlu0 %v1484_v23, %s1504_s7 }
0x128b   :  { %v1090_v51 = vpop.permute.xlu0 %1089 }
0x128c   :  { %v1092_v47 = vadd.f32 %v1090_v51, %v1082_v48  ;;  %v1366_v48 = vld [vmem:[%s2131_s3 + $0x22] ss:$0 sm:$0xff] }
0x128e   :  { %1485 = vtanh.f32 %v1092_v47 }
0x1294   :  { %v1486_v41 = vpop.eup %1485 }
0x1295   :  { %1095 = vrot.lane.b32.xlu2 %v1486_v41, %s1504_s7 }
0x12ef   :  { %v1096_v40 = vpop.permute.xlu2 %1095 }
0x12f0   :  { %v1098_v8 = vmul.f32 %v1096_v40, %v1081_v25 }
0x12f1   :  { %v1146_v44 = vpop.permute.xlu0 %1145 }
0x12f2   :  { %v1153_v52 = vrot.slane %v1098_v8, 2  ;;  %v1148_v45 = vmul.f32 %v1146_v44, %v1128_v29 }
0x12f4   :  { %1150 = vrot.lane.b32.xlu1 %v1148_v45, %s1505_s8  ;;  %1154 = vrot.lane.b32.xlu2 %v1153_v52, %s1504_s7 }
0x134e   :  { %v1155_v46 = vpop.permute.xlu2 %1154 }
0x1366   :  { %v1151_v53 = vpop.permute.xlu1 %1150 }
0x1367   :  { %v1157_v10 = vsel %vm166_vm7, %v1151_v53, %v1155_v46 }
0x1368   :  { %v1159_v17 = vrot.slane %v1157_v10, 6 }
0x136a   :  { %1354 = vmatmul.msk.f32.vlgmr.msra.gmra.mxu2 %vm168_vm8, %v1159_v17 }
0x13ed   :  { %v1179_v54 = vpop.f32.mrf.mxu2 }
0x13ee   :  { %v1182_v55 = vadd.f32 %v2049_v12, %v1179_v54 }
0x13f0   :  { %v1355_v63 = vmul.f32 -1.442695, %v1182_v55 }
0x13f2   :  { %1487 = vpow2.f32 %v1355_v63 }
0x13f8   :  { %v1488_v1 = vpop.eup %1487 }
0x13f9   :  { %v1187_v3 = vadd.f32 1.0, %v1488_v1 }
0x13fb   :  { %1489 = vrcp.f32 %v1187_v3  ;;  %v1199_v9 = vand.u32 2147483648, %v1187_v3  ;;  %v1197_v57 = vand.u32 2147483647, %v1187_v3  ;;  %vm1193_vm14 = vweird.f32 %v1187_v3 }
0x13fc   :  { %1491 = vtanh.f32 %v1182_v55 }
0x13fd   :  { %v1200_v34 = vor.u32 1.1754944e-38, %v1199_v9  ;;  %vm1198_vm8 = vcmp.eq.f32.partialorder %v1197_v57, 8.507059e+37 }
0x1401   :  { %v1490_v5 = vpop.eup %1489 }
0x1402   :  { %v1189_v16 = vmul.f32 %v1490_v5, %v1187_v3  ;;  %vm1194_vm13 = vweird.f32 %v1490_v5  ;;  %v1492_v12 = vpop.eup %1491 }
0x1403   :  { %vm1195_vm15 = vmor %vm1193_vm14, %vm1194_vm13 }
0x1404   :  { %v1190_v7 = vsub.f32 1.0, %v1189_v16 }
0x1406   :  { %v1191_v11 = vmul.f32 %v1490_v5, %v1190_v7 }
0x1408   :  { %v1192_v15 = vadd.f32 %v1490_v5, %v1191_v11 }
0x140a   :  { %v1196_v0 = vsel %vm1195_vm15, %v1490_v5, %v1192_v15 }
0x140b   :  { %v1201_v19 = vsel %vm1198_vm8, %v1200_v34, %v1196_v0 }
0x140c   :  { %v1203_v2 = vsel %vm1643_vm3, %v1492_v12, %v1201_v19  ;;  %vm1270_vm3 = vcmask 130048  }
0x140d   :  { %1206 = vrot.lane.b32.xlu0 %v1203_v2, %s1504_s7 }
0x1415   :  { %252 = vrot.lane.b32.xlu0 %v1843_v26, %s1505_s8 }
0x141d   :  { %679 = vrot.lane.b32.xlu0 %v1982_v33, %s1505_s8  ;;  %v1204_v33 = vmul.f32 %v1203_v2, %v1092_v47 }
0x1425   :  { %1100 = vrot.lane.b32.xlu0 %v1098_v8, %s1505_s8 }
0x147f   :  { %v1207_v58 = vpop.permute.xlu0 %1206 }
0x1480   :  { %v1209_v59 = vmul.f32 %v1207_v58, %v1203_v2 }
0x1482   :  { %1211 = vrot.lane.b32.xlu1 %v1209_v59, %s1505_s8 }
0x1487   :  { %v253_v56 = vpop.permute.xlu0 %252 }
0x1488   :  { %256 = vst.msk [vmem:[#allocation2] sm:$0x3] %vm255_vm0, %v253_v56 }
0x148a   :  { %395 = vrot.lane.b32.xlu1 %v1893_v43, %s1505_s8 }
0x148f   :  { %v680_v50 = vpop.permute.xlu0 %679 }
0x1490   :  { %682 = vst.msk [vmem:[#allocation2 + $0x6] sm:$0x3] %vm255_vm0, %v680_v50 }
0x1492   :  { %816 = vrot.lane.b32.xlu1 %v2010_v4, %s1505_s8  ;;  %v1231_v4 = vld [vmem:[%s2131_s3 + $0x18] sm:$0xff] }
0x1493   :  { %1254 = vmatpush.msra.mxu3 %v1231_v4 }
0x1495   :  { %1255 = vmatpush.msra.mxu3 %v1230_v18 }
0x1497   :  { %v1101_v26 = vpop.permute.xlu0 %1100  ;;  %1256 = vmatpush.msra.mxu3 %v1229_v38 }
0x1498   :  { %1103 = vst.msk [vmem:[#allocation2 + $0xc] sm:$0x3] %vm255_vm0, %v1101_v26 }
0x14f4   :  { %v1212_v60 = vpop.permute.xlu1 %1211 }
0x14f5   :  { %v1214_v62 = vadd.f32 %v1212_v60, %v1204_v33 }
0x14f7   :  { %1493 = vtanh.f32 %v1214_v62 }
0x14fc   :  { %v396_v13 = vpop.permute.xlu1 %395 }
0x14fd   :  { %v1494_v14 = vpop.eup %1493  ;;  %398 = vst.msk [vmem:[#allocation2 + $0x2] sm:$0x3] %vm255_vm0, %v396_v13 }
0x14fe   :  { %1217 = vrot.lane.b32.xlu2 %v1494_v14, %s1504_s7 }
0x1504   :  { %v817_v43 = vpop.permute.xlu1 %816 }
0x1505   :  { %819 = vst.msk [vmem:[#allocation2 + $0x8] sm:$0x3] %vm255_vm0, %v817_v43 }
0x1506   :  { %537 = vrot.lane.b32.xlu2 %v1941_v6, %s1505_s8  ;;  %v1228_v6 = vld [vmem:[%s2131_s3] sm:$0xff] }
0x1507   :  { %1257 = vmatpush.msra.mxu3 %v1228_v6 }
0x150e   :  { %958 = vrot.lane.b32.xlu2 %v2038_v49, %s1505_s8 }
0x1558   :  { %v1218_v49 = vpop.permute.xlu2 %1217 }
0x1559   :  { %v1220_v20 = vmul.f32 %v1218_v49, %v1203_v2 }
0x155b   :  { %1222 = vrot.lane.b32.xlu1 %v1220_v20, %s1505_s8 }
0x1560   :  { %v538_v21 = vpop.permute.xlu2 %537 }
0x1561   :  { %540 = vst.msk [vmem:[#allocation2 + $0x4] sm:$0x3] %vm255_vm0, %v538_v21 }
0x1568   :  { %v959_v22 = vpop.permute.xlu2 %958  ;;  %v1226_v24 = vld [vmem:[#allocation2] sm:$0xff] }
0x1569   :  { %961 = vst.msk [vmem:[#allocation2 + $0xa] sm:$0x3] %vm255_vm0, %v959_v22  ;;  %1356 = vmatmul.msk.f32.vlgmr.msra.gmra.mxu3 %vm166_vm7, %v1226_v24 }
0x15cd   :  { %v1223_v25 = vpop.permute.xlu1 %1222 }
0x15ce   :  { %1225 = vst.msk [vmem:[#allocation2 + $0xe] sm:$0x3] %vm255_vm0, %v1223_v25 }
0x15d5   :  { %v1227_v27 = vld [vmem:[#allocation2 + $0x8] sm:$0xff] }
0x15d6   :  { %1357 = vmatmul.msk.f32.gmra.mxu3 %vm166_vm7, %v1227_v27 }
0x15ec   :  { %v1259_v28 = vpop.f32.mrf.mxu3 }
0x15ed   :  { %v1260_v29 = vadd.f32 %v1364_v61, %v1259_v28 }
0x15ef   :  { %v1265_v31 = vmax.f32 %v1260_v29, 0.0 }
0x15f1   :  { %v1268_v32 = vmul.f32 %v1365_v30, %v1265_v31 }
0x15f3   :  { %v1271_v35 = vsel %vm1270_vm3, %v1268_v32, 0.0 }
0x15f4   :  { %1272 = vadd.xlane.f32.xlu2 %v1271_v35 }
0x1659   :  { %v1262_v36 = vpop.f32.mrf.mxu3 }
0x165a   :  { %v1263_v37 = vadd.f32 %v1364_v61, %v1262_v36 }
0x165c   :  { %v1266_v39 = vmax.f32 %v1263_v37, 0.0 }
0x165e   :  { %v1269_v42 = vmul.f32 %v1365_v30, %v1266_v39 }
0x1660   :  { %v1274_v23 = vsel %vm1270_vm3, %v1269_v42, 0.0 }
0x1661   :  { %1275 = vadd.xlane.f32.xlu0 %v1274_v23 }
0x1667   :  { %v1273_v51 = vpop.xlane.xlu2 %1272 }
0x1668   :  { %v1278_v47 = vadd.f32 %v1366_v48, %v1273_v51 }
0x166a   :  { %v1358_v41 = vmul.f32 -1.442695, %v1278_v47 }
0x166c   :  { %1495 = vpow2.f32 %v1358_v41 }
0x1672   :  { %v1496_v40 = vpop.eup %1495 }
0x1673   :  { %v1286_v8 = vadd.f32 1.0, %v1496_v40 }
0x1675   :  { %1497 = vrcp.f32 %v1286_v8  ;;  %v1299_v46 = vand.u32 2147483648, %v1286_v8  ;;  %v1297_v10 = vand.u32 2147483647, %v1286_v8  ;;  %vm1293_vm1 = vweird.f32 %v1286_v8 }
0x1677   :  { %v1300_v54 = vor.u32 1.1754944e-38, %v1299_v46  ;;  %vm1298_vm5 = vcmp.eq.f32.partialorder %v1297_v10, 8.507059e+37 }
0x167b   :  { %v1498_v44 = vpop.eup %1497 }
0x167c   :  { %v1289_v52 = vmul.f32 %v1498_v44, %v1286_v8  ;;  %vm1294_vm7 = vweird.f32 %v1498_v44 }
0x167d   :  { %vm1295_vm4 = vmor %vm1293_vm1, %vm1294_vm7 }
0x167e   :  { %v1290_v45 = vsub.f32 1.0, %v1289_v52 }
0x1680   :  { %v1291_v53 = vmul.f32 %v1498_v44, %v1290_v45 }
0x1682   :  { %v1292_v17 = vadd.f32 %v1498_v44, %v1291_v53 }
0x1684   :  { %v1296_v55 = vsel %vm1295_vm4, %v1498_v44, %v1292_v17 }
0x1685   :  { %v1301_v63 = vsel %vm1298_vm5, %v1300_v54, %v1296_v55 }
0x1686   :  { %1319 = vst.msk [vmem:[%s2132_s4] sm:$0xff] %vm1318_vm2, %v1301_v63 }
0x16d4   :  { %v1276_v1 = vpop.xlane.xlu0 %1275 }
0x16d5   :  { %v1279_v3 = vadd.f32 %v1366_v48, %v1276_v1 }
0x16d7   :  { %v1359_v5 = vmul.f32 -1.442695, %v1279_v3 }
0x16d9   :  { %1499 = vpow2.f32 %v1359_v5 }
0x16df   :  { %v1500_v16 = vpop.eup %1499 }
0x16e0   :  { %v1287_v7 = vadd.f32 1.0, %v1500_v16 }
0x16e2   :  { %1501 = vrcp.f32 %v1287_v7  ;;  %v1314_v15 = vand.u32 2147483648, %v1287_v7  ;;  %v1312_v0 = vand.u32 2147483647, %v1287_v7  ;;  %vm1308_vm9 = vweird.f32 %v1287_v7 }
0x16e4   :  { %v1315_v19 = vor.u32 1.1754944e-38, %v1314_v15  ;;  %vm1313_vm11 = vcmp.eq.f32.partialorder %v1312_v0, 8.507059e+37 }
0x16e8   :  { %v1502_v9 = vpop.eup %1501 }
0x16e9   :  { %v1304_v11 = vmul.f32 %v1502_v9, %v1287_v7  ;;  %vm1309_vm6 = vweird.f32 %v1502_v9 }
0x16ea   :  { %vm1310_vm10 = vmor %vm1308_vm9, %vm1309_vm6 }
0x16eb   :  { %v1305_v57 = vsub.f32 1.0, %v1304_v11 }
0x16ed   :  { %v1306_v34 = vmul.f32 %v1502_v9, %v1305_v57 }
0x16ef   :  { %v1307_v12 = vadd.f32 %v1502_v9, %v1306_v34 }
0x16f1   :  { %v1311_v2 = vsel %vm1310_vm10, %v1502_v9, %v1307_v12 }
0x16f2   :  { %v1316_v58 = vsel %vm1313_vm11, %v1315_v19, %v1311_v2 }
0x16f3   :  { %1320 = vst.msk [vmem:[%s2132_s4 + $0x8] sm:$0xff] %vm1318_vm2, %v1316_v58 }

</bundles_post_ra>
